<compile_context>
chip_gen: v6e
topology: v6e:2x2x1
jax: 0.10.0
libtpu: 0.0.40
codegen_flags: <defaults>
</compile_context>

<pallas_src>
import math

import jax
import jax.numpy as jnp
from jax.experimental import pallas as pl
from jax.experimental.pallas import tpu as pltpu

HIDDEN_DIM_MULTIPLIER = 10
PAD = 128            # lane padding for every channel dimension
N_WEIGHT_BLOCKS = 10
N_BIAS_ROWS = 16     # 9 real bias rows, padded to a full sublane-tile multiple


# ----------------------------------------------------------------------------
# Pallas kernel: the whole MPGNN forward pass (matmuls + relus + aggregation)
# ----------------------------------------------------------------------------
def mpgnn_kernel(in_x_ref, adj_ref, w_ref, b_ref, out_ref):
    f32 = jnp.float32
    bf16 = jnp.bfloat16

    def wblk(i):                       # (128, 128) bf16 weight block
        return w_ref[i * PAD:(i + 1) * PAD, 0:PAD]

    def wblk_wide(i):                  # (128, 256) bf16 fused conv block
        return w_ref[i * PAD:(i + 1) * PAD, :]

    def bias(i):                       # (1, 128) f32 row; sublane-broadcast on add
        return b_ref[i:i + 1, :]

    def dot(a, w):                     # bf16 operands, f32 accumulation
        return jnp.dot(a.astype(bf16), w, preferred_element_type=f32)

    def relu(t):
        return jnp.maximum(t, 0.0)

    in_x = in_x_ref[...]               # (R, 128) bf16, lanes >= in_ch are zero
    adj = adj_ref[...]                 # (R, R) bf16 block-diag row-normalized adjacency

    # --- in_node_emb MLP: Linear(5,50) ReLU Linear(50,50) ReLU Linear(50,5) ReLU
    x = relu(dot(in_x, wblk(0)) + bias(0))
    x = relu(dot(x, wblk(1)) + bias(1))
    x = relu(dot(x, wblk(2)) + bias(2))

    # --- 3 x SAGEConv (mean aggregation), lin_l/lin_r fused into one wide dot ---
    for l in range(3):
        xw = dot(x, wblk_wide(3 + l))                  # (R, 256): [x@wl | x@wr]
        aggr = jnp.dot(adj, xw[:, 0:PAD].astype(bf16),
                       preferred_element_type=f32)     # adj @ (x @ wl)
        x = relu(aggr + xw[:, PAD:2 * PAD] + bias(3 + l))

    # --- read_out MLP on concat([x, in_x], dim=1) (first linear split in two) ---
    h = relu(dot(x, wblk(6)) + dot(in_x, wblk(7)) + bias(6))
    h = relu(dot(h, wblk(8)) + bias(7))
    out_ref[...] = dot(h, wblk(9)) + bias(8)           # lane-dense (R,128); col 0 real


# ----------------------------------------------------------------------------
# Parameter construction (deterministic, PyTorch-Linear-style uniform init)
# ----------------------------------------------------------------------------
def _init_linear(key, fan_in, fan_out, bias=True):
    k_w, k_b = jax.random.split(key)
    bound = 1.0 / math.sqrt(fan_in)
    # stored as (in, out) so the kernel computes x @ W
    w = jax.random.uniform(k_w, (fan_in, fan_out), jnp.float32, -bound, bound)
    if bias:
        b = jax.random.uniform(k_b, (1, fan_out), jnp.float32, -bound, bound)
        return w, b
    return w, None


def make_params(key, in_ch=5, hid_ch=5, out_ch=1, n_layer=3):
    keys = jax.random.split(key, 16)
    ki = iter(keys)
    params = []

    # in_node_emb
    emb_h = in_ch * HIDDEN_DIM_MULTIPLIER
    for (fi, fo) in ((in_ch, emb_h), (emb_h, emb_h), (emb_h, hid_ch)):
        w, b = _init_linear(next(ki), fi, fo)
        params += [w, b]

    # SAGEConv layers (all hid_ch -> hid_ch, matching the module's conv_list)
    for _ in range(n_layer):
        wl, bl = _init_linear(next(ki), hid_ch, hid_ch, bias=True)
        wr, _ = _init_linear(next(ki), hid_ch, hid_ch, bias=False)
        params += [wl, bl, wr]

    # read_out
    ro_in = hid_ch + in_ch
    ro_h = ro_in * HIDDEN_DIM_MULTIPLIER
    w1, b1 = _init_linear(next(ki), ro_in, ro_h)
    params += [w1[:hid_ch, :], w1[hid_ch:, :], b1]       # split along input dim
    w2, b2 = _init_linear(next(ki), ro_h, ro_h)
    params += [w2, b2]
    w3, b3 = _init_linear(next(ki), ro_h, out_ch)
    params += [w3, b3]
    return params


# ----------------------------------------------------------------------------
# Pack all parameters into two padded slabs (one DMA each).
# Weight slab: (10*128, 256) bf16, one 128-row block per linear, zero padded.
# Bias slab:   (16, 128) f32, one row per bias (9 real rows).
# ----------------------------------------------------------------------------
def pack_params(params):
    (e_w1, e_b1, e_w2, e_b2, e_w3, e_b3,
     c0_wl, c0_bl, c0_wr, c1_wl, c1_bl, c1_wr, c2_wl, c2_bl, c2_wr,
     r_wx, r_wi, r_b1, r_w2, r_b2, r_w3, r_b3) = params

    blocks = []

    def add_w(w):
        blk = jnp.zeros((PAD, 2 * PAD), jnp.float32)
        blocks.append(blk.at[:w.shape[0], :w.shape[1]].set(w))

    def add_conv(wl, wr):
        blk = jnp.zeros((PAD, 2 * PAD), jnp.float32)
        blk = blk.at[:wl.shape[0], :wl.shape[1]].set(wl)
        blk = blk.at[:wr.shape[0], PAD:PAD + wr.shape[1]].set(wr)
        blocks.append(blk)

    add_w(e_w1); add_w(e_w2); add_w(e_w3)
    add_conv(c0_wl, c0_wr); add_conv(c1_wl, c1_wr); add_conv(c2_wl, c2_wr)
    add_w(r_wx); add_w(r_wi); add_w(r_w2); add_w(r_w3)
    w_slab = jnp.concatenate(blocks, axis=0).astype(jnp.bfloat16)

    biases = [e_b1, e_b2, e_b3, c0_bl, c1_bl, c2_bl, r_b1, r_b2, r_b3]
    b_slab = jnp.zeros((N_BIAS_ROWS, PAD), jnp.float32)
    for i, b in enumerate(biases):
        b_slab = b_slab.at[i, :b.shape[-1]].set(b.reshape(-1))
    return w_slab, b_slab


# ----------------------------------------------------------------------------
# Wrapper: edge_index -> dense normalized adjacency (JAX glue), graph stacking,
# then a single pallas_call over graph-chunks.
# ----------------------------------------------------------------------------
def edge_index_to_adj(edge_index, num_nodes):
    # TODO(synk): the edge_index scatter itself has no clean Pallas equivalent
    # at these tiny sizes, so it is densified here in plain JAX glue.
    src = edge_index[0]
    dst = edge_index[1]
    adj = jnp.zeros((num_nodes, num_nodes), jnp.float32).at[dst, src].add(1.0)
    deg = jnp.sum(adj, axis=1, keepdims=True)
    return adj / jnp.maximum(deg, 1.0)


def mpgnn_forward(in_x, edge_index, w_slab, b_slab, out_ch=1, rows_per_block=128):
    # in_x: (B, N, in_ch) float32; edge_index: (B, 2, E) int32
    bsz, n, in_ch = in_x.shape

    # graphs per block: fill ~128 rows per grid step so MXU ops are sublane-dense
    gpb = max(1, min(bsz, rows_per_block // max(n, 1)))
    while bsz % gpb != 0:
        gpb -= 1
    r = gpb * n
    assert r % 8 == 0, "rows per block must be a multiple of 8"
    nb = bsz // gpb

    # per-graph normalized adjacency -> chunked block-diagonal (exact same math)
    adj = jax.vmap(lambda ei: edge_index_to_adj(ei, n))(edge_index)       # (B,N,N)
    adj = adj.reshape(nb, gpb, n, n)
    blkdiag = jnp.zeros((nb, r, r), jnp.float32)
    for g in range(gpb):
        blkdiag = blkdiag.at[:, g * n:(g + 1) * n, g * n:(g + 1) * n].set(adj[:, g])
    blkdiag = blkdiag.astype(jnp.bfloat16).reshape(nb * r, r)

    # stacked, lane-padded, bf16 node features
    in_x_pad = jnp.zeros((bsz * n, PAD), jnp.bfloat16)
    in_x_pad = in_x_pad.at[:, :in_ch].set(
        in_x.reshape(bsz * n, in_ch).astype(jnp.bfloat16))

    # rough advisory cost (helps XLA overlap the adjacency glue with input DMAs)
    flops = int(nb * r * (2 * PAD * PAD * 7 + 2 * PAD * 2 * PAD * 3
                          + 2 * r * PAD * 3))
    bytes_accessed = int(in_x_pad.size * 2 + blkdiag.size * 2 + w_slab.size * 2
                         + b_slab.size * 4 + bsz * n * PAD * 4)

    out = pl.pallas_call(
        mpgnn_kernel,
        out_shape=jax.ShapeDtypeStruct((bsz * n, PAD), jnp.float32),
        grid_spec=pltpu.PrefetchScalarGridSpec(
            num_scalar_prefetch=0,
            grid=(nb,),
            in_specs=[
                pl.BlockSpec((r, PAD), lambda c: (c, 0)),
                pl.BlockSpec((r, r), lambda c: (c, 0)),
                # weight / bias slabs: same block every step -> DMA'd once,
                # stay resident in VMEM across the whole grid.
                pl.BlockSpec((N_WEIGHT_BLOCKS * PAD, 2 * PAD), lambda c: (0, 0)),
                pl.BlockSpec((N_BIAS_ROWS, PAD), lambda c: (0, 0)),
            ],
            out_specs=pl.BlockSpec((r, PAD), lambda c: (c, 0)),
        ),
        compiler_params=pltpu.CompilerParams(
            dimension_semantics=("parallel",)),
        cost_estimate=pl.CostEstimate(flops=flops, transcendentals=0,
                                      bytes_accessed=bytes_accessed),
    )(in_x_pad, blkdiag, w_slab, b_slab)

    return out[:, :out_ch].reshape(bsz, n, out_ch)   # lane-dense store; slice outside


# ----------------------------------------------------------------------------
# Pure-JAX reference (for a sanity check of the kernel), single graph
# ----------------------------------------------------------------------------
def mpgnn_reference(in_x, edge_index, params):
    adj = edge_index_to_adj(edge_index, in_x.shape[0])
    (e_w1, e_b1, e_w2, e_b2, e_w3, e_b3,
     c0_wl, c0_bl, c0_wr, c1_wl, c1_bl, c1_wr, c2_wl, c2_bl, c2_wr,
     r_wx, r_wi, r_b1, r_w2, r_b2, r_w3, r_b3) = params
    relu = lambda t: jnp.maximum(t, 0.0)
    x = relu(in_x @ e_w1 + e_b1)
    x = relu(x @ e_w2 + e_b2)
    x = relu(x @ e_w3 + e_b3)
    for wl, bl, wr in ((c0_wl, c0_bl, c0_wr), (c1_wl, c1_bl, c1_wr),
                       (c2_wl, c2_bl, c2_wr)):
        x = relu((adj @ x) @ wl + bl + x @ wr)
    h = relu(x @ r_wx + in_x @ r_wi + r_b1)
    h = relu(h @ r_w2 + r_b2)
    return h @ r_w3 + r_b3


if __name__ == "__main__":
    key = jax.random.PRNGKey(0)
    k_x, k_src, k_dst, k_params = jax.random.split(key, 4)

    B = 8           # batch of graphs (stacked 8-per-block -> one 128-row slab)
    N = 16          # number of graph nodes per graph
    E = 32          # number of directed edges per graph
    IN_CH = 5       # in_node_channels
    HID_CH = 5      # hidden_node_channels
    OUT_CH = 1      # out_node_channels

    in_x = jax.random.normal(k_x, (B, N, IN_CH), jnp.float32)
    edge_index = jnp.stack([
        jax.random.randint(k_src, (B, E), 0, N, jnp.int32),
        jax.random.randint(k_dst, (B, E), 0, N, jnp.int32),
    ], axis=1)      # (B, 2, E)

    params = make_params(k_params, IN_CH, HID_CH, OUT_CH, n_layer=3)
    w_slab, b_slab = pack_params(params)

    y = mpgnn_forward(in_x, edge_index, w_slab, b_slab, out_ch=OUT_CH)
    y = jax.block_until_ready(y)

    y_ref = jax.vmap(mpgnn_reference, in_axes=(0, 0, None))(
        in_x, edge_index, params)

    assert y.shape == (B, N, OUT_CH)
    assert bool(jnp.all(jnp.isfinite(y)))
    # bf16 MXU operands/inputs + (adj@x)@wl -> adj@(x@wl) reassociation change
    # rounding slightly; 5e-2 comfortably covers the accumulated bf16 error here.
    assert bool(jnp.allclose(y, y_ref, rtol=5e-2, atol=5e-2)), "mismatch vs reference"

    print("KERNEL_OK")
</pallas_src>

<mosaic_0001>
module attributes {stable_mosaic.version = 11 : i64} {
  func.func @mpgnn_kernel(%arg0: i32, %arg1: memref<128x128xbf16, #tpu.memory_space<vmem>>, %arg2: memref<128x128xbf16, #tpu.memory_space<vmem>>, %arg3: memref<1280x256xbf16, #tpu.memory_space<vmem>>, %arg4: memref<16x128xf32, #tpu.memory_space<vmem>>, %arg5: memref<128x128xf32, #tpu.memory_space<vmem>>) attributes {dimension_semantics = [#tpu.dimension_semantics<parallel>], iteration_bounds = array<i64: 1>, scalar_prefetch = 0 : i64, scratch_operands = 0 : i64, tpu.core_type = #tpu.core_type<tc>, window_params = [{transform_indices = @transform_0, window_bounds = array<i64: 128, 128>}, {transform_indices = @transform_1, window_bounds = array<i64: 128, 128>}, {pipeline_mode = #tpu.pipeline_mode<synchronous>, transform_indices = @transform_2, window_bounds = array<i64: 1280, 256>}, {pipeline_mode = #tpu.pipeline_mode<synchronous>, transform_indices = @transform_3, window_bounds = array<i64: 16, 128>}, {transform_indices = @transform_4, window_bounds = array<i64: 128, 128>}]} {
    %c0 = arith.constant 0 : index
    %c0_0 = arith.constant 0 : index
    %0 = vector.load %arg1[%c0, %c0_0] : memref<128x128xbf16, #tpu.memory_space<vmem>>, vector<128x128xbf16>
    %c0_1 = arith.constant 0 : index
    %c0_2 = arith.constant 0 : index
    %1 = vector.load %arg2[%c0_1, %c0_2] : memref<128x128xbf16, #tpu.memory_space<vmem>>, vector<128x128xbf16>
    %c0_3 = arith.constant 0 : index
    %c0_4 = arith.constant 0 : index
    %2 = vector.load %arg3[%c0_3, %c0_4] : memref<1280x256xbf16, #tpu.memory_space<vmem>>, vector<128x128xbf16>
    %cst = arith.constant dense<0.000000e+00> : vector<128x128xf32>
    %3 = tpu.matmul %0, %2, %cst {dimension_numbers = #tpu.dot_dimension_numbers<[1], [0], [0], [1], [0, 0, 1, 1], [], []>} : vector<128x128xbf16>, vector<128x128xbf16>, vector<128x128xf32> -> vector<128x128xf32>
    %c0_5 = arith.constant 0 : index
    %c0_6 = arith.constant 0 : index
    %4 = vector.load %arg4[%c0_5, %c0_6] : memref<16x128xf32, #tpu.memory_space<vmem>>, vector<1x128xf32>
    %5 = vector.broadcast %4 : vector<1x128xf32> to vector<128x128xf32>
    %6 = arith.addf %3, %5 : vector<128x128xf32>
    %cst_7 = arith.constant 0.000000e+00 : f32
    %7 = vector.broadcast %cst_7 : f32 to vector<128x128xf32>
    %8 = arith.maximumf %6, %7 : vector<128x128xf32>
    %c128 = arith.constant 128 : index
    %c0_8 = arith.constant 0 : index
    %9 = vector.load %arg3[%c128, %c0_8] : memref<1280x256xbf16, #tpu.memory_space<vmem>>, vector<128x128xbf16>
    %10 = arith.truncf %8 : vector<128x128xf32> to vector<128x128xbf16>
    %cst_9 = arith.constant dense<0.000000e+00> : vector<128x128xf32>
    %11 = tpu.matmul %10, %9, %cst_9 {dimension_numbers = #tpu.dot_dimension_numbers<[1], [0], [0], [1], [0, 0, 1, 1], [], []>} : vector<128x128xbf16>, vector<128x128xbf16>, vector<128x128xf32> -> vector<128x128xf32>
    %c1 = arith.constant 1 : index
    %c0_10 = arith.constant 0 : index
    %12 = vector.load %arg4[%c1, %c0_10] : memref<16x128xf32, #tpu.memory_space<vmem>>, vector<1x128xf32>
    %13 = vector.broadcast %12 : vector<1x128xf32> to vector<128x128xf32>
    %14 = arith.addf %11, %13 : vector<128x128xf32>
    %cst_11 = arith.constant 0.000000e+00 : f32
    %15 = vector.broadcast %cst_11 : f32 to vector<128x128xf32>
    %16 = arith.maximumf %14, %15 : vector<128x128xf32>
    %c256 = arith.constant 256 : index
    %c0_12 = arith.constant 0 : index
    %17 = vector.load %arg3[%c256, %c0_12] : memref<1280x256xbf16, #tpu.memory_space<vmem>>, vector<128x128xbf16>
    %18 = arith.truncf %16 : vector<128x128xf32> to vector<128x128xbf16>
    %cst_13 = arith.constant dense<0.000000e+00> : vector<128x128xf32>
    %19 = tpu.matmul %18, %17, %cst_13 {dimension_numbers = #tpu.dot_dimension_numbers<[1], [0], [0], [1], [0, 0, 1, 1], [], []>} : vector<128x128xbf16>, vector<128x128xbf16>, vector<128x128xf32> -> vector<128x128xf32>
    %c2 = arith.constant 2 : index
    %c0_14 = arith.constant 0 : index
    %20 = vector.load %arg4[%c2, %c0_14] : memref<16x128xf32, #tpu.memory_space<vmem>>, vector<1x128xf32>
    %21 = vector.broadcast %20 : vector<1x128xf32> to vector<128x128xf32>
    %22 = arith.addf %19, %21 : vector<128x128xf32>
    %cst_15 = arith.constant 0.000000e+00 : f32
    %23 = vector.broadcast %cst_15 : f32 to vector<128x128xf32>
    %24 = arith.maximumf %22, %23 : vector<128x128xf32>
    %c384 = arith.constant 384 : index
    %c0_16 = arith.constant 0 : index
    %25 = vector.load %arg3[%c384, %c0_16] : memref<1280x256xbf16, #tpu.memory_space<vmem>>, vector<128x256xbf16>
    %26 = arith.truncf %24 : vector<128x128xf32> to vector<128x128xbf16>
    %cst_17 = arith.constant dense<0.000000e+00> : vector<128x256xf32>
    %27 = tpu.matmul %26, %25, %cst_17 {dimension_numbers = #tpu.dot_dimension_numbers<[1], [0], [0], [1], [0, 0, 1, 1], [], []>} : vector<128x128xbf16>, vector<128x256xbf16>, vector<128x256xf32> -> vector<128x256xf32>
    %28 = vector.extract_strided_slice %27 {offsets = [0, 0], sizes = [128, 128], strides = [1, 1]} : vector<128x256xf32> to vector<128x128xf32>
    %29 = arith.truncf %28 : vector<128x128xf32> to vector<128x128xbf16>
    %cst_18 = arith.constant dense<0.000000e+00> : vector<128x128xf32>
    %30 = tpu.matmul %1, %29, %cst_18 {dimension_numbers = #tpu.dot_dimension_numbers<[1], [0], [0], [1], [0, 0, 1, 1], [], []>} : vector<128x128xbf16>, vector<128x128xbf16>, vector<128x128xf32> -> vector<128x128xf32>
    %31 = vector.extract_strided_slice %27 {offsets = [0, 128], sizes = [128, 128], strides = [1, 1]} : vector<128x256xf32> to vector<128x128xf32>
    %32 = arith.addf %30, %31 : vector<128x128xf32>
    %c3 = arith.constant 3 : index
    %c0_19 = arith.constant 0 : index
    %33 = vector.load %arg4[%c3, %c0_19] : memref<16x128xf32, #tpu.memory_space<vmem>>, vector<1x128xf32>
    %34 = vector.broadcast %33 : vector<1x128xf32> to vector<128x128xf32>
    %35 = arith.addf %32, %34 : vector<128x128xf32>
    %cst_20 = arith.constant 0.000000e+00 : f32
    %36 = vector.broadcast %cst_20 : f32 to vector<128x128xf32>
    %37 = arith.maximumf %35, %36 : vector<128x128xf32>
    %c512 = arith.constant 512 : index
    %c0_21 = arith.constant 0 : index
    %38 = vector.load %arg3[%c512, %c0_21] : memref<1280x256xbf16, #tpu.memory_space<vmem>>, vector<128x256xbf16>
    %39 = arith.truncf %37 : vector<128x128xf32> to vector<128x128xbf16>
    %cst_22 = arith.constant dense<0.000000e+00> : vector<128x256xf32>
    %40 = tpu.matmul %39, %38, %cst_22 {dimension_numbers = #tpu.dot_dimension_numbers<[1], [0], [0], [1], [0, 0, 1, 1], [], []>} : vector<128x128xbf16>, vector<128x256xbf16>, vector<128x256xf32> -> vector<128x256xf32>
    %41 = vector.extract_strided_slice %40 {offsets = [0, 0], sizes = [128, 128], strides = [1, 1]} : vector<128x256xf32> to vector<128x128xf32>
    %42 = arith.truncf %41 : vector<128x128xf32> to vector<128x128xbf16>
    %cst_23 = arith.constant dense<0.000000e+00> : vector<128x128xf32>
    %43 = tpu.matmul %1, %42, %cst_23 {dimension_numbers = #tpu.dot_dimension_numbers<[1], [0], [0], [1], [0, 0, 1, 1], [], []>} : vector<128x128xbf16>, vector<128x128xbf16>, vector<128x128xf32> -> vector<128x128xf32>
    %44 = vector.extract_strided_slice %40 {offsets = [0, 128], sizes = [128, 128], strides = [1, 1]} : vector<128x256xf32> to vector<128x128xf32>
    %45 = arith.addf %43, %44 : vector<128x128xf32>
    %c4 = arith.constant 4 : index
    %c0_24 = arith.constant 0 : index
    %46 = vector.load %arg4[%c4, %c0_24] : memref<16x128xf32, #tpu.memory_space<vmem>>, vector<1x128xf32>
    %47 = vector.broadcast %46 : vector<1x128xf32> to vector<128x128xf32>
    %48 = arith.addf %45, %47 : vector<128x128xf32>
    %cst_25 = arith.constant 0.000000e+00 : f32
    %49 = vector.broadcast %cst_25 : f32 to vector<128x128xf32>
    %50 = arith.maximumf %48, %49 : vector<128x128xf32>
    %c640 = arith.constant 640 : index
    %c0_26 = arith.constant 0 : index
    %51 = vector.load %arg3[%c640, %c0_26] : memref<1280x256xbf16, #tpu.memory_space<vmem>>, vector<128x256xbf16>
    %52 = arith.truncf %50 : vector<128x128xf32> to vector<128x128xbf16>
    %cst_27 = arith.constant dense<0.000000e+00> : vector<128x256xf32>
    %53 = tpu.matmul %52, %51, %cst_27 {dimension_numbers = #tpu.dot_dimension_numbers<[1], [0], [0], [1], [0, 0, 1, 1], [], []>} : vector<128x128xbf16>, vector<128x256xbf16>, vector<128x256xf32> -> vector<128x256xf32>
    %54 = vector.extract_strided_slice %53 {offsets = [0, 0], sizes = [128, 128], strides = [1, 1]} : vector<128x256xf32> to vector<128x128xf32>
    %55 = arith.truncf %54 : vector<128x128xf32> to vector<128x128xbf16>
    %cst_28 = arith.constant dense<0.000000e+00> : vector<128x128xf32>
    %56 = tpu.matmul %1, %55, %cst_28 {dimension_numbers = #tpu.dot_dimension_numbers<[1], [0], [0], [1], [0, 0, 1, 1], [], []>} : vector<128x128xbf16>, vector<128x128xbf16>, vector<128x128xf32> -> vector<128x128xf32>
    %57 = vector.extract_strided_slice %53 {offsets = [0, 128], sizes = [128, 128], strides = [1, 1]} : vector<128x256xf32> to vector<128x128xf32>
    %58 = arith.addf %56, %57 : vector<128x128xf32>
    %c5 = arith.constant 5 : index
    %c0_29 = arith.constant 0 : index
    %59 = vector.load %arg4[%c5, %c0_29] : memref<16x128xf32, #tpu.memory_space<vmem>>, vector<1x128xf32>
    %60 = vector.broadcast %59 : vector<1x128xf32> to vector<128x128xf32>
    %61 = arith.addf %58, %60 : vector<128x128xf32>
    %cst_30 = arith.constant 0.000000e+00 : f32
    %62 = vector.broadcast %cst_30 : f32 to vector<128x128xf32>
    %63 = arith.maximumf %61, %62 : vector<128x128xf32>
    %c768 = arith.constant 768 : index
    %c0_31 = arith.constant 0 : index
    %64 = vector.load %arg3[%c768, %c0_31] : memref<1280x256xbf16, #tpu.memory_space<vmem>>, vector<128x128xbf16>
    %65 = arith.truncf %63 : vector<128x128xf32> to vector<128x128xbf16>
    %cst_32 = arith.constant dense<0.000000e+00> : vector<128x128xf32>
    %66 = tpu.matmul %65, %64, %cst_32 {dimension_numbers = #tpu.dot_dimension_numbers<[1], [0], [0], [1], [0, 0, 1, 1], [], []>} : vector<128x128xbf16>, vector<128x128xbf16>, vector<128x128xf32> -> vector<128x128xf32>
    %c896 = arith.constant 896 : index
    %c0_33 = arith.constant 0 : index
    %67 = vector.load %arg3[%c896, %c0_33] : memref<1280x256xbf16, #tpu.memory_space<vmem>>, vector<128x128xbf16>
    %cst_34 = arith.constant dense<0.000000e+00> : vector<128x128xf32>
    %68 = tpu.matmul %0, %67, %cst_34 {dimension_numbers = #tpu.dot_dimension_numbers<[1], [0], [0], [1], [0, 0, 1, 1], [], []>} : vector<128x128xbf16>, vector<128x128xbf16>, vector<128x128xf32> -> vector<128x128xf32>
    %69 = arith.addf %66, %68 : vector<128x128xf32>
    %c6 = arith.constant 6 : index
    %c0_35 = arith.constant 0 : index
    %70 = vector.load %arg4[%c6, %c0_35] : memref<16x128xf32, #tpu.memory_space<vmem>>, vector<1x128xf32>
    %71 = vector.broadcast %70 : vector<1x128xf32> to vector<128x128xf32>
    %72 = arith.addf %69, %71 : vector<128x128xf32>
    %cst_36 = arith.constant 0.000000e+00 : f32
    %73 = vector.broadcast %cst_36 : f32 to vector<128x128xf32>
    %74 = arith.maximumf %72, %73 : vector<128x128xf32>
    %c1024 = arith.constant 1024 : index
    %c0_37 = arith.constant 0 : index
    %75 = vector.load %arg3[%c1024, %c0_37] : memref<1280x256xbf16, #tpu.memory_space<vmem>>, vector<128x128xbf16>
    %76 = arith.truncf %74 : vector<128x128xf32> to vector<128x128xbf16>
    %cst_38 = arith.constant dense<0.000000e+00> : vector<128x128xf32>
    %77 = tpu.matmul %76, %75, %cst_38 {dimension_numbers = #tpu.dot_dimension_numbers<[1], [0], [0], [1], [0, 0, 1, 1], [], []>} : vector<128x128xbf16>, vector<128x128xbf16>, vector<128x128xf32> -> vector<128x128xf32>
    %c7 = arith.constant 7 : index
    %c0_39 = arith.constant 0 : index
    %78 = vector.load %arg4[%c7, %c0_39] : memref<16x128xf32, #tpu.memory_space<vmem>>, vector<1x128xf32>
    %79 = vector.broadcast %78 : vector<1x128xf32> to vector<128x128xf32>
    %80 = arith.addf %77, %79 : vector<128x128xf32>
    %cst_40 = arith.constant 0.000000e+00 : f32
    %81 = vector.broadcast %cst_40 : f32 to vector<128x128xf32>
    %82 = arith.maximumf %80, %81 : vector<128x128xf32>
    %c1152 = arith.constant 1152 : index
    %c0_41 = arith.constant 0 : index
    %83 = vector.load %arg3[%c1152, %c0_41] : memref<1280x256xbf16, #tpu.memory_space<vmem>>, vector<128x128xbf16>
    %84 = arith.truncf %82 : vector<128x128xf32> to vector<128x128xbf16>
    %cst_42 = arith.constant dense<0.000000e+00> : vector<128x128xf32>
    %85 = tpu.matmul %84, %83, %cst_42 {dimension_numbers = #tpu.dot_dimension_numbers<[1], [0], [0], [1], [0, 0, 1, 1], [], []>} : vector<128x128xbf16>, vector<128x128xbf16>, vector<128x128xf32> -> vector<128x128xf32>
    %c8 = arith.constant 8 : index
    %c0_43 = arith.constant 0 : index
    %86 = vector.load %arg4[%c8, %c0_43] : memref<16x128xf32, #tpu.memory_space<vmem>>, vector<1x128xf32>
    %87 = vector.broadcast %86 : vector<1x128xf32> to vector<128x128xf32>
    %88 = arith.addf %85, %87 : vector<128x128xf32>
    %c0_44 = arith.constant 0 : index
    %c0_45 = arith.constant 0 : index
    %89 = vector.load %arg5[%c0_44, %c0_45] : memref<128x128xf32, #tpu.memory_space<vmem>>, vector<128x128xf32>
    tpu.vector_store %arg5[%c0_44, %c0_45], %88 {strides = array<i32>} : memref<128x128xf32, #tpu.memory_space<vmem>>, vector<128x128xf32>,
    return
  }
  func.func @transform_0(%arg0: i32) -> (i32, i32) {
    %c0_i32 = arith.constant 0 : i32
    %c0_i32_0 = arith.constant 0 : i32
    return %arg0, %c0_i32 : i32, i32
  }
  func.func @transform_1(%arg0: i32) -> (i32, i32) {
    %c0_i32 = arith.constant 0 : i32
    %c0_i32_0 = arith.constant 0 : i32
    return %arg0, %c0_i32 : i32, i32
  }
  func.func @transform_2(%arg0: i32) -> (i32, i32) {
    %c0_i32 = arith.constant 0 : i32
    %c0_i32_0 = arith.constant 0 : i32
    %c0_i32_1 = arith.constant 0 : i32
    return %c0_i32, %c0_i32_0 : i32, i32
  }
  func.func @transform_3(%arg0: i32) -> (i32, i32) {
    %c0_i32 = arith.constant 0 : i32
    %c0_i32_0 = arith.constant 0 : i32
    %c0_i32_1 = arith.constant 0 : i32
    return %c0_i32, %c0_i32_0 : i32, i32
  }
  func.func @transform_4(%arg0: i32) -> (i32, i32) {
    %c0_i32 = arith.constant 0 : i32
    %c0_i32_0 = arith.constant 0 : i32
    return %arg0, %c0_i32 : i32, i32
  }
}

</mosaic_0001>

<bundles_post_ra>
// kernel: tpu_custom_call.1
= control target key start
LH: loop header
LB: loop body
LE: loop exit
PB: predicated region body
PF: predicated region fallthrough
CT: control target
= control target key end

     0   :  { %9 = vsyncpa [#allocation3], 0  ;;  %s3816_s0 = inlined_call_operand.hbm [shape: bf16[128,128], index: 0, kind: input, shape index: {}]   ;;  %s3817_s1 = inlined_call_operand.hbm [shape: bf16[128,128], index: 1, kind: input, shape index: {}]   ;;  %s3818_s2 = inlined_call_operand.hbm [shape: bf16[1280,256], index: 2, kind: input, shape index: {}]   ;;  %s3819_s3 = inlined_call_operand.hbm [shape: f32[16,128], index: 3, kind: input, shape index: {}]   ;;  %s3820_s4 = inlined_call_operand.hbm [shape: f32[128,128], index: 4, kind: output, shape index: {}]  }
   0x1   :  { %10 = vsyncpa [#allocation6], 0 }
   0x2   :  { %11 = vsyncpa [#allocation9], 0 }
   0x3   :  { %12 = vsyncpa [#allocation4], 0  ;;  %s3486_s15 = smov [#allocation5]   ;;  %s3487_s17 = smov [#allocation2]  }
   0x4   :  { %s30_s16 = sshll.u32 %s3486_s15, 4  ;;  %s18_s18 = sshll.u32 %s3487_s17, 4  ;;  %s31_s16 = int_to_ptr.vmem [resolvable:$true] %s30_s16  ;;  %s19_s18 = int_to_ptr.vmem [resolvable:$true] %s18_s18 }
   0x5   :  { %s3386_s19 = scalar_lea.vmem %s31_s16, 1024  ;;  %p3391_p1 = scmp.lt.s32.totalorder %s31_s16, %s31_s16 }
   0x6   :  { %p3387_p0 = scmp.ne.s32.totalorder %s31_s16, %s3386_s19  ;;  %p3392_p2 = scmp.lt.s32.totalorder %s3386_s19, %s3386_s19 }
   0x8   :  { %p3393_p3 = por %p3392_p2, %p3391_p1 }
   0xa   :  { %p3394_p4 = pnand %p3393_p3, %p3387_p0 }
   0xc   :  { %3397 = shalt.err (!%p3394_p4)
}
   0xd   :  { %s3488_s20 = smov 64   ;;  %s3489_s21 = smov 4  }
   0xe   :  { %36 = dma.hbm_to_vmem [thread:$0]  %s3817_s1, 1024, %s31_s16, [#allocation6], %s3488_s20, %s3488_s20, %s3489_s21  }
   0xf   :  { %s3406_s24 = scalar_lea.vmem %s19_s18, 1024  ;;  %p3411_p6 = scmp.lt.s32.totalorder %s19_s18, %s19_s18 }
  0x10   :  { %p3407_p5 = scmp.ne.s32.totalorder %s19_s18, %s3406_s24  ;;  %p3412_p7 = scmp.lt.s32.totalorder %s3406_s24, %s3406_s24 }
  0x12   :  { %p3413_p8 = por %p3412_p7, %p3411_p6 }
  0x14   :  { %p3414_p9 = pnand %p3413_p8, %p3407_p5 }
  0x16   :  { %3417 = shalt.err (!%p3414_p9)
}
  0x17   :  { %24 = dma.hbm_to_vmem [thread:$0]  %s3816_s0, 1024, %s19_s18, [#allocation3], %s3488_s20, %s3488_s20, %s3489_s21  }
  0x18   :  { %s3490_s27 = smov [#allocation7]  }
  0x19   :  { %s42_s28 = sshll.u32 %s3490_s27, 4  ;;  %s43_s28 = int_to_ptr.vmem [resolvable:$true] %s42_s28 }
  0x1a   :  { %s3426_s29 = scalar_lea.vmem %s43_s28, 20480  ;;  %p3431_p11 = scmp.lt.s32.totalorder %s43_s28, %s43_s28 }
  0x1b   :  { %p3427_p10 = scmp.ne.s32.totalorder %s43_s28, %s3426_s29  ;;  %p3432_p12 = scmp.lt.s32.totalorder %s3426_s29, %s3426_s29 }
  0x1d   :  { %p3433_p13 = por %p3432_p12, %p3431_p11 }
  0x1f   :  { %p3434_p0 = pnand %p3433_p13, %p3427_p10 }
  0x21   :  { %3437 = shalt.err (!%p3434_p0)
}
  0x22   :  { %s3491_s1 = smov 128   ;;  %s3492_s30 = smov 8  }
  0x23   :  { %48 = dma.hbm_to_vmem [thread:$0]  %s3818_s2, 20480, %s43_s28, [#allocation6], %s3491_s1, %s3491_s1, %s3492_s30  }
  0x24   :  { %s3493_s0 = smov [#allocation8]  }
  0x25   :  { %s54_s7 = sshll.u32 %s3493_s0, 4  ;;  %s55_s7 = int_to_ptr.vmem [resolvable:$true] %s54_s7 }
  0x26   :  { %s3446_s8 = scalar_lea.vmem %s55_s7, 256  ;;  %p3451_p2 = scmp.lt.s32.totalorder %s55_s7, %s55_s7 }
  0x27   :  { %p3447_p1 = scmp.ne.s32.totalorder %s55_s7, %s3446_s8  ;;  %p3452_p3 = scmp.lt.s32.totalorder %s3446_s8, %s3446_s8 }
  0x29   :  { %p3453_p4 = por %p3452_p3, %p3451_p2 }
  0x2b   :  { %p3454_p5 = pnand %p3453_p4, %p3447_p1 }
  0x2d   :  { %3457 = shalt.err (!%p3454_p5)
}
  0x2e   :  { %60 = dma.hbm_to_vmem [thread:$0]  %s3819_s3, 256, %s55_s7, [#allocation9], %s3491_s1, %s3491_s1, %s3492_s30  }
  0x2f   :  { %3478 = dma.done.wait [#allocation3], 1024  }
  0x30   :  { %3479 = vsyncadd [#allocation3], 4294966272 }
  0x31   :  { %3480 = dma.done.wait [#allocation6], 21504  }
  0x32   :  { %3481 = vsyncadd [#allocation6], 4294945792 }
  0x33   :  { %3482 = dma.done.wait [#allocation9], 256  }
  0x34   :  { %3483 = vsyncadd [#allocation9], 4294967040  ;;  %v3226_v0 = vld [vmem:[#allocation7 + $0x70] ss:$8 sps:$4 sm:$0xff]   ;;  %v3227_v1 = vld [vmem:[#allocation7 + $0x60] ss:$8 sps:$4 sm:$0xff]  }
  0x35   :  { %2896 = vmatprep.subr.bf16.mxu0 %v3226_v0  ;;  %v3228_v2 = vld [vmem:[#allocation7 + $0x50] ss:$8 sps:$4 sm:$0xff]   ;;  %v3229_v3 = vld [vmem:[#allocation7 + $0x40] ss:$8 sps:$4 sm:$0xff]   ;;  %s3495_s2 = smov [#allocation10]  }
  0x36   :  { %2897 = vmatpush3.bf16.msra.mxu0 %v3226_v0  ;;  %v3234_v4 = vld [vmem:[#allocation2] sm:$0xff]   ;;  %v3230_v5 = vld [vmem:[#allocation7 + $0x30] ss:$8 sps:$4 sm:$0xff]   ;;  %v3235_v14 = vld [vmem:[#allocation2 + $0x8] sm:$0xff]   ;;  %s2593_s3 = sshll.u32 %s3495_s2, 4  ;;  %s2594_s3 = int_to_ptr.vmem [resolvable:$true] %s2593_s3 }
  0x37   :  { %2898 = vmatprep.subr.bf16.mxu0 %v3227_v1  ;;  %2912 = vmatprep.mubr.bf16.mxu0 %v3234_v4  ;;  %v3231_v6 = vld [vmem:[#allocation7 + $0x20] ss:$8 sps:$4 sm:$0xff]   ;;  %v3242_v7 = vld [vmem:[#allocation7 + $0xf0] ss:$8 sps:$4 sm:$0xff]   ;;  %s3458_s11 = scalar_lea.vmem %s2594_s3, 2048  ;;  %p3463_p7 = scmp.lt.s32.totalorder %s2594_s3, %s2594_s3 }
  0x38   :  { %v3243_v8 = vld [vmem:[#allocation7 + $0xe0] ss:$8 sps:$4 sm:$0xff]   ;;  %2928 = vmatprep.subr.bf16.mxu1 %v3242_v7  ;;  %v3232_v9 = vld [vmem:[#allocation7 + $0x10] ss:$8 sps:$4 sm:$0xff]   ;;  %p3459_p6 = scmp.ne.s32.totalorder %s2594_s3, %s3458_s11  ;;  %p3464_p8 = scmp.lt.s32.totalorder %s3458_s11, %s3458_s11 }
  0x39   :  { %2929 = vmatpush3.bf16.msra.mxu1 %v3242_v7  ;;  %v3244_v10 = vld [vmem:[#allocation7 + $0xd0] ss:$8 sps:$4 sm:$0xff]   ;;  %v3233_v11 = vld [vmem:[#allocation7] ss:$8 sps:$4 sm:$0xff]  }
  0x3a   :  { %2899 = vmatpush3.bf16.msra.mxu0 %v3227_v1  ;;  %2930 = vmatprep.subr.bf16.mxu1 %v3243_v8  ;;  %v3245_v12 = vld [vmem:[#allocation7 + $0xc0] ss:$8 sps:$4 sm:$0xff]   ;;  %v3246_v13 = vld [vmem:[#allocation7 + $0xb0] ss:$8 sps:$4 sm:$0xff]   ;;  %p3465_p9 = por %p3464_p8, %p3463_p7 }
  0x3b   :  { %2900 = vmatprep.subr.bf16.mxu0 %v3228_v2  ;;  %v3236_v15 = vld [vmem:[#allocation2 + $0x10] sm:$0xff]   ;;  %v3237_v16 = vld [vmem:[#allocation2 + $0x18] sm:$0xff]   ;;  %v3238_v17 = vld [vmem:[#allocation2 + $0x20] sm:$0xff]  }
  0x3c   :  { %v3239_v18 = vld [vmem:[#allocation2 + $0x28] sm:$0xff]   ;;  %v3240_v19 = vld [vmem:[#allocation2 + $0x30] sm:$0xff]   ;;  %v3241_v20 = vld [vmem:[#allocation2 + $0x38] sm:$0xff]   ;;  %p3466_p10 = pnand %p3465_p9, %p3459_p6 }
  0x3d   :  { %2931 = vmatpush3.bf16.msra.mxu1 %v3243_v8  ;;  %v3247_v21 = vld [vmem:[#allocation7 + $0xa0] ss:$8 sps:$4 sm:$0xff]   ;;  %v3248_v22 = vld [vmem:[#allocation7 + $0x90] ss:$8 sps:$4 sm:$0xff]  }
  0x3e   :  { %2901 = vmatpush3.bf16.msra.mxu0 %v3228_v2  ;;  %2932 = vmatprep.subr.bf16.mxu1 %v3244_v10  ;;  %v3249_v23 = vld [vmem:[#allocation7 + $0x80] ss:$8 sps:$4 sm:$0xff]   ;;  %v3250_v24 = vld [vmem:[#allocation7 + $0x170] ss:$8 sps:$4 sm:$0xff]  }
  0x3f   :  { %2902 = vmatprep.subr.bf16.mxu0 %v3229_v3  ;;  %v3251_v25 = vld [vmem:[#allocation7 + $0x160] ss:$8 sps:$4 sm:$0xff]   ;;  %v3252_v26 = vld [vmem:[#allocation7 + $0x150] ss:$8 sps:$4 sm:$0xff]  }
  0x40   :  { %v3253_v27 = vld [vmem:[#allocation7 + $0x140] ss:$8 sps:$4 sm:$0xff]   ;;  %v3254_v28 = vld [vmem:[#allocation7 + $0x130] ss:$8 sps:$4 sm:$0xff]  }
  0x41   :  { %2933 = vmatpush3.bf16.msra.mxu1 %v3244_v10  ;;  %v2607_v31 = vld [vmem:[#allocation8] ss:$0 sm:$0xff] }
  0x42   :  { %2903 = vmatpush3.bf16.msra.mxu0 %v3229_v3  ;;  %2934 = vmatprep.subr.bf16.mxu1 %v3245_v12 }
  0x43   :  { %2904 = vmatprep.subr.bf16.mxu0 %v3230_v5 }
  0x45   :  { %2935 = vmatpush3.bf16.msra.mxu1 %v3245_v12 }
  0x46   :  { %2905 = vmatpush3.bf16.msra.mxu0 %v3230_v5  ;;  %2936 = vmatprep.subr.bf16.mxu1 %v3246_v13 }
  0x47   :  { %2906 = vmatprep.subr.bf16.mxu0 %v3231_v6 }
  0x49   :  { %2937 = vmatpush3.bf16.msra.mxu1 %v3246_v13 }
  0x4a   :  { %2907 = vmatpush3.bf16.msra.mxu0 %v3231_v6  ;;  %2938 = vmatprep.subr.bf16.mxu1 %v3247_v21 }
  0x4b   :  { %2908 = vmatprep.subr.bf16.mxu0 %v3232_v9 }
  0x4d   :  { %2939 = vmatpush3.bf16.msra.mxu1 %v3247_v21 }
  0x4e   :  { %2909 = vmatpush3.bf16.msra.mxu0 %v3232_v9  ;;  %2940 = vmatprep.subr.bf16.mxu1 %v3248_v22 }
  0x4f   :  { %2910 = vmatprep.subr.bf16.mxu0 %v3233_v11 }
  0x51   :  { %2941 = vmatpush3.bf16.msra.mxu1 %v3248_v22  ;;  %v3255_v22 = vld [vmem:[#allocation7 + $0x120] ss:$8 sps:$4 sm:$0xff]  }
  0x52   :  { %2911 = vmatpush3.bf16.msra.mxu0 %v3233_v11  ;;  %2942 = vmatprep.subr.bf16.mxu1 %v3249_v23 }
  0x53   :  { %2960 = vmatprep.subr.bf16.mxu0 %v3250_v24 }
  0x55   :  { %2913 = vmatmul.mubr.bf16.vlgmr.msra.gmra.mxu0 %v3235_v14  ;;  %2943 = vmatpush3.bf16.msra.mxu1 %v3249_v23  ;;  %v3256_v23 = vld [vmem:[#allocation7 + $0x110] ss:$8 sps:$4 sm:$0xff]  }
  0x56   :  { %2916 = vmatprep.mubr.bf16.mxu0 %v3236_v15  ;;  %2961 = vmatpush3.bf16.msra.mxu0 %v3250_v24  ;;  %v3257_v24 = vld [vmem:[#allocation7 + $0x100] ss:$8 sps:$4 sm:$0xff]  }
  0x57   :  { %2962 = vmatprep.subr.bf16.mxu0 %v3251_v25 }
  0x5a   :  { %2963 = vmatpush3.bf16.msra.mxu0 %v3251_v25  ;;  %v3258_v25 = vld [vmem:[#allocation7 + $0x1f0] ss:$8 sps:$4 sm:$0xff]  }
  0x5b   :  { %2964 = vmatprep.subr.bf16.mxu0 %v3252_v26 }
  0x5d   :  { %2917 = vmatmul.mubr.bf16.gmra.mxu0 %v3237_v16 }
  0x5e   :  { %2920 = vmatprep.mubr.bf16.mxu0 %v3238_v17  ;;  %2965 = vmatpush3.bf16.msra.mxu0 %v3252_v26  ;;  %v3260_v26 = vld [vmem:[#allocation7 + $0x1f4] ss:$8 sps:$4 sm:$0xff]  }
  0x5f   :  { %2966 = vmatprep.subr.bf16.mxu0 %v3253_v27  ;;  %820 = vmatprep.subr.bf16.mxu1 %v3260_v26 }
  0x62   :  { %2967 = vmatpush3.bf16.msra.mxu0 %v3253_v27  ;;  %v3263_v27 = vld [vmem:[#allocation7 + $0x1e4] ss:$8 sps:$4 sm:$0xff]  }
  0x63   :  { %2968 = vmatprep.subr.bf16.mxu0 %v3254_v28 }
  0x65   :  { %2921 = vmatmul.mubr.bf16.gmra.mxu0 %v3239_v18 }
  0x66   :  { %2924 = vmatprep.mubr.bf16.mxu0 %v3240_v19  ;;  %2969 = vmatpush3.bf16.msra.mxu0 %v3254_v28  ;;  %v3261_v28 = vld [vmem:[#allocation7 + $0x1e0] ss:$8 sps:$4 sm:$0xff]  }
  0x67   :  { %2970 = vmatprep.subr.bf16.mxu0 %v3255_v22 }
  0x6a   :  { %2971 = vmatpush3.bf16.msra.mxu0 %v3255_v22 }
  0x6b   :  { %2972 = vmatprep.subr.bf16.mxu0 %v3256_v23 }
  0x6d   :  { %2925 = vmatmul.mubr.bf16.gmra.mxu0 %v3241_v20 }
  0x6e   :  { %2973 = vmatpush3.bf16.msra.mxu0 %v3256_v23 }
  0x6f   :  { %2974 = vmatprep.subr.bf16.mxu0 %v3257_v24 }
  0x72   :  { %2975 = vmatpush3.bf16.msra.mxu0 %v3257_v24 }
 0x115   :  { %v2914_v29 = vpop.f32.mrf.mxu0 }
 0x116   :  { %v266_v35 = vadd.f32 %v2914_v29, %v2607_v31  ;;  %v3266_v29 = vld [vmem:[#allocation7 + $0x1d4] ss:$8 sps:$4 sm:$0xff]  }
 0x117   :  { %v257_v30 = vpop.f32.mrf.mxu0 }
 0x118   :  { %v258_v33 = vadd.f32 %v2607_v31, %v257_v30  ;;  %v322_v42 = vmax.f32 %v266_v35, 0.0  ;;  %v3264_v30 = vld [vmem:[#allocation7 + $0x1d0] ss:$8 sps:$4 sm:$0xff]  }
 0x119   :  { %v2915_v32 = vpop.f32.mrf.mxu0 }
 0x11a   :  { %v269_v34 = vadd.f32 %v2915_v32, %v2607_v31  ;;  %v320_v40 = vmax.f32 %v258_v33, 0.0  ;;  %v3267_v32 = vld [vmem:[#allocation7 + $0x1c0] ss:$8 sps:$4 sm:$0xff]   ;;  %v3272_v33 = vld [vmem:[#allocation7 + $0x1b4] ss:$8 sps:$4 sm:$0xff]  }
 0x11b   :  { %v260_v36 = vpop.f32.mrf.mxu0 }
 0x11c   :  { %v261_v37 = vadd.f32 %v2607_v31, %v260_v36  ;;  %v323_v38 = vmax.f32 %v269_v34, 0.0  ;;  %v3270_v34 = vld [vmem:[#allocation7 + $0x1b0] ss:$8 sps:$4 sm:$0xff]  }
 0x11d   :  { %v2918_v39 = vpop.f32.mrf.mxu0 }
 0x11e   :  { %v321_v41 = vmax.f32 %v261_v37, 0.0  ;;  %v282_v43 = vadd.f32 %v2918_v39, %v2607_v31  ;;  %v353_v47 = vpack.c.bf16 %v323_v38, %v322_v42  ;;  %v2624_v37 = vld [vmem:[#allocation8 + $0x1] ss:$0 sm:$0xff] }
 0x11f   :  { %v273_v44 = vpop.f32.mrf.mxu0 }
 0x120   :  { %v274_v45 = vadd.f32 %v2607_v31, %v273_v44  ;;  %v352_v46 = vpack.c.bf16 %v321_v41, %v320_v40  ;;  %v326_v50 = vmax.f32 %v282_v43, 0.0 }
 0x121   :  { %v2919_v48 = vpop.f32.mrf.mxu0 }
 0x122   :  { %v285_v49 = vadd.f32 %v2919_v48, %v2607_v31  ;;  %2944 = vmatprep.mubr.bf16.mxu1 %v352_v46  ;;  %v324_v52 = vmax.f32 %v274_v45, 0.0 }
 0x123   :  { %v276_v51 = vpop.f32.mrf.mxu0  ;;  %2945 = vmatmul.mubr.bf16.vlgmr.msra.gmra.mxu1 %v353_v47 }
 0x124   :  { %v327_v53 = vmax.f32 %v285_v49, 0.0  ;;  %v277_v54 = vadd.f32 %v2607_v31, %v276_v51  ;;  %821 = vmatpush1.bf16.msra.mxu1 %v3258_v25 }
 0x125   :  { %v2922_v55 = vpop.f32.mrf.mxu0  ;;  %822 = vmatprep.subr.bf16.mxu1 %v3263_v27 }
 0x126   :  { %v325_v56 = vmax.f32 %v277_v54, 0.0  ;;  %v355_v57 = vpack.c.bf16 %v327_v53, %v326_v50  ;;  %v298_v58 = vadd.f32 %v2922_v55, %v2607_v31 }
 0x127   :  { %v289_v59 = vpop.f32.mrf.mxu0 }
 0x128   :  { %v290_v60 = vadd.f32 %v2607_v31, %v289_v59  ;;  %v354_v61 = vpack.c.bf16 %v325_v56, %v324_v52  ;;  %v330_v0 = vmax.f32 %v298_v58, 0.0  ;;  %823 = vmatpush1.bf16.msra.mxu1 %v3261_v28  ;;  %v3275_v28 = vld [vmem:[#allocation7 + $0x1a4] ss:$8 sps:$4 sm:$0xff]  }
 0x129   :  { %v2923_v62 = vpop.f32.mrf.mxu0  ;;  %824 = vmatprep.subr.bf16.mxu1 %v3266_v29  ;;  %v3273_v29 = vld [vmem:[#allocation7 + $0x1a0] ss:$8 sps:$4 sm:$0xff]  }
 0x12a   :  { %v301_v63 = vadd.f32 %v2923_v62, %v2607_v31  ;;  %2948 = vmatprep.mubr.bf16.mxu1 %v354_v61  ;;  %v328_v2 = vmax.f32 %v290_v60, 0.0 }
 0x12b   :  { %v292_v1 = vpop.f32.mrf.mxu0  ;;  %2949 = vmatmul.mubr.bf16.gmra.mxu1 %v355_v57 }
 0x12c   :  { %v331_v3 = vmax.f32 %v301_v63, 0.0  ;;  %v293_v4 = vadd.f32 %v2607_v31, %v292_v1  ;;  %825 = vmatpush1.bf16.msra.mxu1 %v3264_v30  ;;  %v3278_v30 = vld [vmem:[#allocation7 + $0x194] ss:$8 sps:$4 sm:$0xff]  }
 0x12d   :  { %v2926_v5 = vpop.f32.mrf.mxu0 }
 0x12e   :  { %v329_v6 = vmax.f32 %v293_v4, 0.0  ;;  %v357_v7 = vpack.c.bf16 %v331_v3, %v330_v0  ;;  %v314_v8 = vadd.f32 %v2926_v5, %v2607_v31 }
 0x12f   :  { %v305_v9 = vpop.f32.mrf.mxu0 }
 0x130   :  { %v356_v10 = vpack.c.bf16 %v329_v6, %v328_v2  ;;  %v306_v11 = vadd.f32 %v2607_v31, %v305_v9  ;;  %v334_v14 = vmax.f32 %v314_v8, 0.0 }
 0x131   :  { %v2927_v12 = vpop.f32.mrf.mxu0 }
 0x132   :  { %2952 = vmatprep.mubr.bf16.mxu1 %v356_v10  ;;  %v317_v13 = vadd.f32 %v2927_v12, %v2607_v31  ;;  %v332_v16 = vmax.f32 %v306_v11, 0.0 }
 0x133   :  { %2953 = vmatmul.mubr.bf16.gmra.mxu1 %v357_v7  ;;  %v308_v15 = vpop.f32.mrf.mxu0 }
 0x134   :  { %v335_v17 = vmax.f32 %v317_v13, 0.0  ;;  %v309_v18 = vadd.f32 %v2607_v31, %v308_v15  ;;  %v3269_v31 = vld [vmem:[#allocation7 + $0x1c4] ss:$8 sps:$4 sm:$0xff]  }
 0x135   :  { %826 = vmatprep.subr.bf16.mxu1 %v3269_v31  ;;  %v3276_v31 = vld [vmem:[#allocation7 + $0x190] ss:$8 sps:$4 sm:$0xff]  }
 0x136   :  { %v333_v19 = vmax.f32 %v309_v18, 0.0  ;;  %v359_v20 = vpack.c.bf16 %v335_v17, %v334_v14  ;;  %827 = vmatpush1.bf16.msra.mxu1 %v3267_v32  ;;  %v3281_v32 = vld [vmem:[#allocation7 + $0x184] ss:$8 sps:$4 sm:$0xff]  }
 0x137   :  { %828 = vmatprep.subr.bf16.mxu1 %v3272_v33  ;;  %v3279_v33 = vld [vmem:[#allocation7 + $0x180] ss:$8 sps:$4 sm:$0xff]  }
 0x138   :  { %v358_v21 = vpack.c.bf16 %v333_v19, %v332_v16 }
 0x13a   :  { %2956 = vmatprep.mubr.bf16.mxu1 %v358_v21  ;;  %829 = vmatpush1.bf16.msra.mxu1 %v3270_v34  ;;  %v3494_v34 = vmov 0  }
 0x13b   :  { %2957 = vmatmul.mubr.bf16.gmra.mxu1 %v359_v20  ;;  %830 = vmatprep.subr.bf16.mxu1 %v3275_v28  ;;  %v3547_v28 = vld [vmem:[#allocation5] sm:$0xff]  }
 0x13c   :  { %852 = vmatprep.mubr.bf16.mxu1 %v3494_v34 }
 0x13e   :  { %831 = vmatpush1.bf16.msra.mxu1 %v3273_v29 }
 0x13f   :  { %832 = vmatprep.subr.bf16.mxu1 %v3278_v30 }
 0x142   :  { %833 = vmatpush1.bf16.msra.mxu1 %v3276_v31 }
 0x143   :  { %834 = vmatprep.subr.bf16.mxu1 %v3281_v32 }
 0x146   :  { %835 = vmatpush1.bf16.msra.mxu1 %v3279_v33 }
 0x1e3   :  { %v2946_v35 = vpop.f32.mrf.mxu1 }
 0x1e4   :  { %v456_v41 = vadd.f32 %v2946_v35, %v2624_v37 }
 0x1e5   :  { %v447_v36 = vpop.f32.mrf.mxu1 }
 0x1e6   :  { %v448_v39 = vadd.f32 %v2624_v37, %v447_v36  ;;  %v512_v48 = vmax.f32 %v456_v41, 0.0 }
 0x1e7   :  { %v2947_v38 = vpop.f32.mrf.mxu1 }
 0x1e8   :  { %v459_v40 = vadd.f32 %v2947_v38, %v2624_v37  ;;  %v510_v46 = vmax.f32 %v448_v39, 0.0 }
 0x1e9   :  { %v450_v42 = vpop.f32.mrf.mxu1 }
 0x1ea   :  { %v451_v43 = vadd.f32 %v2624_v37, %v450_v42  ;;  %v513_v44 = vmax.f32 %v459_v40, 0.0 }
 0x1eb   :  { %v2950_v45 = vpop.f32.mrf.mxu1 }
 0x1ec   :  { %v511_v47 = vmax.f32 %v451_v43, 0.0  ;;  %v543_v51 = vpack.c.bf16 %v513_v44, %v512_v48  ;;  %v472_v55 = vadd.f32 %v2950_v45, %v2624_v37 }
 0x1ed   :  { %v463_v49 = vpop.f32.mrf.mxu1 }
 0x1ee   :  { %v542_v50 = vpack.c.bf16 %v511_v47, %v510_v46  ;;  %v464_v53 = vadd.f32 %v2624_v37, %v463_v49  ;;  %v516_v62 = vmax.f32 %v472_v55, 0.0 }
 0x1ef   :  { %v2951_v52 = vpop.f32.mrf.mxu1 }
 0x1f0   :  { %v475_v54 = vadd.f32 %v2951_v52, %v2624_v37  ;;  %2976 = vmatprep.mubr.bf16.mxu0 %v542_v50  ;;  %v514_v60 = vmax.f32 %v464_v53, 0.0 }
 0x1f1   :  { %v466_v56 = vpop.f32.mrf.mxu1  ;;  %2977 = vmatmul.mubr.bf16.vlgmr.msra.gmra.mxu0 %v543_v51 }
 0x1f2   :  { %v467_v57 = vadd.f32 %v2624_v37, %v466_v56  ;;  %v517_v58 = vmax.f32 %v475_v54, 0.0 }
 0x1f3   :  { %v2954_v59 = vpop.f32.mrf.mxu1 }
 0x1f4   :  { %v515_v61 = vmax.f32 %v467_v57, 0.0  ;;  %v488_v63 = vadd.f32 %v2954_v59, %v2624_v37  ;;  %v545_v3 = vpack.c.bf16 %v517_v58, %v516_v62 }
 0x1f5   :  { %v479_v0 = vpop.f32.mrf.mxu1 }
 0x1f6   :  { %v480_v1 = vadd.f32 %v2624_v37, %v479_v0  ;;  %v544_v2 = vpack.c.bf16 %v515_v61, %v514_v60  ;;  %v520_v6 = vmax.f32 %v488_v63, 0.0 }
 0x1f7   :  { %v2955_v4 = vpop.f32.mrf.mxu1 }
 0x1f8   :  { %v491_v5 = vadd.f32 %v2955_v4, %v2624_v37  ;;  %2980 = vmatprep.mubr.bf16.mxu0 %v544_v2  ;;  %v518_v8 = vmax.f32 %v480_v1, 0.0 }
 0x1f9   :  { %v482_v7 = vpop.f32.mrf.mxu1  ;;  %2981 = vmatmul.mubr.bf16.gmra.mxu0 %v545_v3 }
 0x1fa   :  { %v521_v9 = vmax.f32 %v491_v5, 0.0  ;;  %v483_v10 = vadd.f32 %v2624_v37, %v482_v7 }
 0x1fb   :  { %v2958_v11 = vpop.f32.mrf.mxu1 }
 0x1fc   :  { %v519_v12 = vmax.f32 %v483_v10, 0.0  ;;  %v547_v13 = vpack.c.bf16 %v521_v9, %v520_v6  ;;  %v504_v14 = vadd.f32 %v2958_v11, %v2624_v37 }
 0x1fd   :  { %v495_v15 = vpop.f32.mrf.mxu1 }
 0x1fe   :  { %v546_v16 = vpack.c.bf16 %v519_v12, %v518_v8  ;;  %v496_v17 = vadd.f32 %v2624_v37, %v495_v15  ;;  %v524_v20 = vmax.f32 %v504_v14, 0.0 }
 0x1ff   :  { %v2959_v18 = vpop.f32.mrf.mxu1 }
 0x200   :  { %2984 = vmatprep.mubr.bf16.mxu0 %v546_v16  ;;  %v507_v19 = vadd.f32 %v2959_v18, %v2624_v37  ;;  %v522_v22 = vmax.f32 %v496_v17, 0.0 }
 0x201   :  { %2985 = vmatmul.mubr.bf16.gmra.mxu0 %v547_v13  ;;  %v498_v21 = vpop.f32.mrf.mxu1 }
 0x202   :  { %v525_v23 = vmax.f32 %v507_v19, 0.0  ;;  %v499_v24 = vadd.f32 %v2624_v37, %v498_v21  ;;  %v2633_v37 = vld [vmem:[#allocation8 + $0x2] ss:$0 sm:$0xff] }
 0x204   :  { %v523_v25 = vmax.f32 %v499_v24, 0.0  ;;  %v549_v26 = vpack.c.bf16 %v525_v23, %v524_v20 }
 0x206   :  { %v548_v27 = vpack.c.bf16 %v523_v25, %v522_v22 }
 0x208   :  { %2988 = vmatprep.mubr.bf16.mxu0 %v548_v27 }
 0x209   :  { %2989 = vmatmul.mubr.bf16.gmra.mxu0 %v549_v26 }
 0x20a   :  { %3008 = vmatprep.mubr.bf16.mxu0 %v3547_v28 }
 0x2b1   :  { %v2978_v35 = vpop.f32.mrf.mxu0 }
 0x2b2   :  { %v646_v49 = vadd.f32 %v2978_v35, %v2633_v37 }
 0x2b3   :  { %v637_v36 = vpop.f32.mrf.mxu0 }
 0x2b4   :  { %v638_v39 = vadd.f32 %v2633_v37, %v637_v36  ;;  %v702_v52 = vmax.f32 %v646_v49, 0.0 }
 0x2b5   :  { %v2979_v38 = vpop.f32.mrf.mxu0 }
 0x2b6   :  { %v700_v43 = vmax.f32 %v638_v39, 0.0  ;;  %v649_v46 = vadd.f32 %v2979_v38, %v2633_v37 }
 0x2b7   :  { %v640_v40 = vpop.f32.mrf.mxu0 }
 0x2b8   :  { %v641_v41 = vadd.f32 %v2633_v37, %v640_v40  ;;  %v703_v50 = vmax.f32 %v649_v46, 0.0 }
 0x2b9   :  { %v2982_v42 = vpop.f32.mrf.mxu0 }
 0x2ba   :  { %v701_v44 = vmax.f32 %v641_v41, 0.0  ;;  %v733_v53 = vpack.c.bf16 %v703_v50, %v702_v52  ;;  %v662_v63 = vadd.f32 %v2982_v42, %v2633_v37 }
 0x2bb   :  { %v653_v45 = vpop.f32.mrf.mxu0 }
 0x2bc   :  { %v732_v47 = vpack.c.bf16 %v701_v44, %v700_v43  ;;  %v654_v56 = vadd.f32 %v2633_v37, %v653_v45  ;;  %v706_v2 = vmax.f32 %v662_v63, 0.0 }
 0x2bd   :  { %v2983_v48 = vpop.f32.mrf.mxu0 }
 0x2be   :  { %853 = vmatmul.mubr.bf16.vlgmr.msra.gmra.mxu1 %v732_v47  ;;  %v704_v59 = vmax.f32 %v654_v56, 0.0  ;;  %v665_v60 = vadd.f32 %v2983_v48, %v2633_v37 }
 0x2bf   :  { %862 = vmatprep.mubr.bf16.mxu1 %v3494_v34  ;;  %v656_v51 = vpop.f32.mrf.mxu0 }
 0x2c0   :  { %v657_v54 = vadd.f32 %v2633_v37, %v656_v51  ;;  %v707_v0 = vmax.f32 %v665_v60, 0.0 }
 0x2c1   :  { %v2986_v55 = vpop.f32.mrf.mxu0 }
 0x2c2   :  { %v705_v57 = vmax.f32 %v657_v54, 0.0  ;;  %v735_v3 = vpack.c.bf16 %v707_v0, %v706_v2  ;;  %v678_v13 = vadd.f32 %v2986_v55, %v2633_v37 }
 0x2c3   :  { %v669_v58 = vpop.f32.mrf.mxu0 }
 0x2c4   :  { %v734_v61 = vpack.c.bf16 %v705_v57, %v704_v59  ;;  %v670_v6 = vadd.f32 %v2633_v37, %v669_v58  ;;  %v710_v16 = vmax.f32 %v678_v13, 0.0  ;;  %v3589_v13 = vld [vmem:[#allocation5 + $0x20] sm:$0xff]  }
 0x2c5   :  { %v2987_v62 = vpop.f32.mrf.mxu0 }
 0x2c6   :  { %863 = vmatmul.mubr.bf16.gmra.mxu1 %v733_v53  ;;  %v708_v9 = vmax.f32 %v670_v6, 0.0  ;;  %v681_v10 = vadd.f32 %v2987_v62, %v2633_v37  ;;  %v3581_v6 = vld [vmem:[#allocation5 + $0x8] sm:$0xff]  }
 0x2c7   :  { %872 = vmatprep.mubr.bf16.mxu1 %v3494_v34  ;;  %v672_v1 = vpop.f32.mrf.mxu0 }
 0x2c8   :  { %v673_v4 = vadd.f32 %v2633_v37, %v672_v1  ;;  %v711_v14 = vmax.f32 %v681_v10, 0.0  ;;  %v3293_v10 = vld [vmem:[#allocation7 + $0x260] ss:$8 sps:$4 sm:$0xff]  }
 0x2c9   :  { %v2990_v5 = vpop.f32.mrf.mxu0 }
 0x2ca   :  { %v709_v7 = vmax.f32 %v673_v4, 0.0  ;;  %v737_v17 = vpack.c.bf16 %v711_v14, %v710_v16  ;;  %v694_v22 = vadd.f32 %v2990_v5, %v2633_v37  ;;  %v3292_v5 = vld [vmem:[#allocation7 + $0x274] ss:$8 sps:$4 sm:$0xff]   ;;  %v3296_v14 = vld [vmem:[#allocation7 + $0x250] ss:$8 sps:$4 sm:$0xff]  }
 0x2cb   :  { %v685_v8 = vpop.f32.mrf.mxu0  ;;  %v3299_v16 = vld [vmem:[#allocation7 + $0x240] ss:$8 sps:$4 sm:$0xff]  }
 0x2cc   :  { %v736_v11 = vpack.c.bf16 %v709_v7, %v708_v9  ;;  %v686_v18 = vadd.f32 %v2633_v37, %v685_v8  ;;  %v714_v25 = vmax.f32 %v694_v22, 0.0  ;;  %v3583_v7 = vld [vmem:[#allocation5 + $0x10] sm:$0xff]   ;;  %v3295_v9 = vld [vmem:[#allocation7 + $0x264] ss:$8 sps:$4 sm:$0xff]  }
 0x2cd   :  { %v2991_v12 = vpop.f32.mrf.mxu0  ;;  %v3290_v8 = vld [vmem:[#allocation7 + $0x270] ss:$8 sps:$4 sm:$0xff]   ;;  %v3307_v22 = vld [vmem:[#allocation7 + $0x224] ss:$8 sps:$4 sm:$0xff]  }
 0x2ce   :  { %873 = vmatmul.mubr.bf16.gmra.mxu1 %v734_v61  ;;  %v712_v20 = vmax.f32 %v686_v18, 0.0  ;;  %v697_v23 = vadd.f32 %v2991_v12, %v2633_v37  ;;  %v3587_v12 = vld [vmem:[#allocation5 + $0x18] sm:$0xff]   ;;  %v3593_v18 = vld [vmem:[#allocation5 + $0x28] sm:$0xff]  }
 0x2cf   :  { %882 = vmatprep.mubr.bf16.mxu1 %v3494_v34  ;;  %v688_v15 = vpop.f32.mrf.mxu0 }
 0x2d0   :  { %v689_v19 = vadd.f32 %v2633_v37, %v688_v15  ;;  %v715_v26 = vmax.f32 %v697_v23, 0.0  ;;  %v3301_v15 = vld [vmem:[#allocation7 + $0x244] ss:$8 sps:$4 sm:$0xff]   ;;  %v3305_v23 = vld [vmem:[#allocation7 + $0x220] ss:$8 sps:$4 sm:$0xff]  }
 0x2d2   :  { %v713_v21 = vmax.f32 %v689_v19, 0.0  ;;  %v739_v27 = vpack.c.bf16 %v715_v26, %v714_v25  ;;  %v3595_v19 = vld [vmem:[#allocation5 + $0x30] sm:$0xff]   ;;  %v3313_v26 = vld [vmem:[#allocation7 + $0x204] ss:$8 sps:$4 sm:$0xff]  }
 0x2d3   :  { %v3308_v25 = vld [vmem:[#allocation7 + $0x210] ss:$8 sps:$4 sm:$0xff]  }
 0x2d4   :  { %v738_v24 = vpack.c.bf16 %v713_v21, %v712_v20  ;;  %v3302_v20 = vld [vmem:[#allocation7 + $0x230] ss:$8 sps:$4 sm:$0xff]  }
 0x2d5   :  { %v3599_v21 = vld [vmem:[#allocation5 + $0x38] sm:$0xff]  }
 0x2d6   :  { %883 = vmatmul.mubr.bf16.gmra.mxu1 %v735_v3 }
 0x2d7   :  { %892 = vmatprep.mubr.bf16.mxu1 %v3494_v34 }
 0x2de   :  { %893 = vmatmul.mubr.bf16.gmra.mxu1 %v736_v11  ;;  %v3298_v11 = vld [vmem:[#allocation7 + $0x254] ss:$8 sps:$4 sm:$0xff]  }
 0x2df   :  { %902 = vmatprep.mubr.bf16.mxu1 %v3494_v34 }
 0x2e6   :  { %903 = vmatmul.mubr.bf16.gmra.mxu1 %v737_v17  ;;  %v3304_v17 = vld [vmem:[#allocation7 + $0x234] ss:$8 sps:$4 sm:$0xff]  }
 0x2e7   :  { %912 = vmatprep.mubr.bf16.mxu1 %v3494_v34 }
 0x2ee   :  { %913 = vmatmul.mubr.bf16.gmra.mxu1 %v738_v24  ;;  %v3310_v24 = vld [vmem:[#allocation7 + $0x214] ss:$8 sps:$4 sm:$0xff]  }
 0x2ef   :  { %922 = vmatprep.mubr.bf16.mxu1 %v3494_v34 }
 0x2f6   :  { %923 = vmatmul.mubr.bf16.gmra.mxu1 %v739_v27  ;;  %v3311_v27 = vld [vmem:[#allocation7 + $0x200] ss:$8 sps:$4 sm:$0xff]  }
 0x2f7   :  { %3040 = vmatprep.mubr.bf16.mxu1 %v3547_v28 }
 0x37e   :  { %v854_v29 = vpop.f32.mrf.mxu1 }
 0x380   :  { %v3551_v30 = vpop.f32.mrf.mxu1 }
 0x382   :  { %v858_v31 = vpop.f32.mrf.mxu1 }
 0x383   :  { %v933_v32 = vpack.c.bf16 %v858_v31, %v854_v29 }
 0x384   :  { %v3553_v33 = vpop.f32.mrf.mxu1 }
 0x386   :  { %v864_v35 = vpop.f32.mrf.mxu1 }
 0x388   :  { %v3555_v36 = vpop.f32.mrf.mxu1 }
 0x38a   :  { %v868_v37 = vpop.f32.mrf.mxu1 }
 0x38b   :  { %v934_v38 = vpack.c.bf16 %v868_v37, %v864_v35  ;;  %v3604_v37 = vld [vmem:[#allocation8 + $0x3] ss:$0 sm:$0xff] }
 0x38c   :  { %v3557_v39 = vpop.f32.mrf.mxu1 }
 0x38e   :  { %v874_v40 = vpop.f32.mrf.mxu1 }
 0x390   :  { %v3559_v41 = vpop.f32.mrf.mxu1 }
 0x392   :  { %v878_v42 = vpop.f32.mrf.mxu1 }
 0x393   :  { %v935_v4 = vpack.c.bf16 %v878_v42, %v874_v40 }
 0x394   :  { %v3561_v43 = vpop.f32.mrf.mxu1 }
 0x396   :  { %v884_v44 = vpop.f32.mrf.mxu1 }
 0x398   :  { %v3563_v45 = vpop.f32.mrf.mxu1 }
 0x39a   :  { %v888_v46 = vpop.f32.mrf.mxu1 }
 0x39b   :  { %v936_v3 = vpack.c.bf16 %v888_v46, %v884_v44 }
 0x39c   :  { %v3565_v47 = vpop.f32.mrf.mxu1 }
 0x39e   :  { %v894_v48 = vpop.f32.mrf.mxu1 }
 0x3a0   :  { %v3567_v49 = vpop.f32.mrf.mxu1 }
 0x3a2   :  { %v898_v50 = vpop.f32.mrf.mxu1 }
 0x3a3   :  { %v937_v2 = vpack.c.bf16 %v898_v50, %v894_v48 }
 0x3a4   :  { %v3569_v51 = vpop.f32.mrf.mxu1 }
 0x3a6   :  { %v904_v52 = vpop.f32.mrf.mxu1 }
 0x3a8   :  { %v3571_v53 = vpop.f32.mrf.mxu1 }
 0x3aa   :  { %v908_v54 = vpop.f32.mrf.mxu1 }
 0x3ab   :  { %v938_v1 = vpack.c.bf16 %v908_v54, %v904_v52 }
 0x3ac   :  { %v3573_v55 = vpop.f32.mrf.mxu1 }
 0x3ae   :  { %v914_v56 = vpop.f32.mrf.mxu1 }
 0x3b0   :  { %v3575_v57 = vpop.f32.mrf.mxu1 }
 0x3b2   :  { %v918_v58 = vpop.f32.mrf.mxu1 }
 0x3b3   :  { %v939_v0 = vpack.c.bf16 %v918_v58, %v914_v56 }
 0x3b4   :  { %v3577_v59 = vpop.f32.mrf.mxu1 }
 0x3b6   :  { %v924_v60 = vpop.f32.mrf.mxu1 }
 0x3b8   :  { %v3579_v61 = vpop.f32.mrf.mxu1 }
 0x3ba   :  { %v928_v62 = vpop.f32.mrf.mxu1 }
 0x3bb   :  { %v940_v63 = vpack.c.bf16 %v928_v62, %v924_v60 }
 0x3bd   :  { %2992 = vmatprep.subr.bf16.mxu0 %v940_v63 }
 0x3be   :  { %2993 = vmatpush3.bf16.msra.mxu0 %v940_v63 }
 0x3bf   :  { %2994 = vmatprep.subr.bf16.mxu0 %v939_v0 }
 0x3c2   :  { %2995 = vmatpush3.bf16.msra.mxu0 %v939_v0 }
 0x3c3   :  { %2996 = vmatprep.subr.bf16.mxu0 %v938_v1 }
 0x3c6   :  { %2997 = vmatpush3.bf16.msra.mxu0 %v938_v1 }
 0x3c7   :  { %2998 = vmatprep.subr.bf16.mxu0 %v937_v2 }
 0x3ca   :  { %2999 = vmatpush3.bf16.msra.mxu0 %v937_v2 }
 0x3cb   :  { %3000 = vmatprep.subr.bf16.mxu0 %v936_v3 }
 0x3ce   :  { %3001 = vmatpush3.bf16.msra.mxu0 %v936_v3 }
 0x3cf   :  { %3002 = vmatprep.subr.bf16.mxu0 %v935_v4 }
 0x3d2   :  { %3003 = vmatpush3.bf16.msra.mxu0 %v935_v4 }
 0x3d3   :  { %3004 = vmatprep.subr.bf16.mxu0 %v934_v38 }
 0x3d6   :  { %3005 = vmatpush3.bf16.msra.mxu0 %v934_v38 }
 0x3d7   :  { %3006 = vmatprep.subr.bf16.mxu0 %v933_v32 }
 0x3da   :  { %3007 = vmatpush3.bf16.msra.mxu0 %v933_v32 }
 0x3db   :  { %1227 = vmatprep.subr.bf16.mxu0 %v3292_v5 }
 0x3dd   :  { %3009 = vmatmul.mubr.bf16.vlgmr.msra.gmra.mxu0 %v3581_v6 }
 0x3de   :  { %3012 = vmatprep.mubr.bf16.mxu0 %v3583_v7  ;;  %1228 = vmatpush1.bf16.msra.mxu0 %v3290_v8 }
 0x3df   :  { %1229 = vmatprep.subr.bf16.mxu0 %v3295_v9 }
 0x3e2   :  { %1230 = vmatpush1.bf16.msra.mxu0 %v3293_v10 }
 0x3e3   :  { %1231 = vmatprep.subr.bf16.mxu0 %v3298_v11 }
 0x3e5   :  { %3013 = vmatmul.mubr.bf16.gmra.mxu0 %v3587_v12 }
 0x3e6   :  { %3016 = vmatprep.mubr.bf16.mxu0 %v3589_v13  ;;  %1232 = vmatpush1.bf16.msra.mxu0 %v3296_v14 }
 0x3e7   :  { %1233 = vmatprep.subr.bf16.mxu0 %v3301_v15 }
 0x3ea   :  { %1234 = vmatpush1.bf16.msra.mxu0 %v3299_v16 }
 0x3eb   :  { %1235 = vmatprep.subr.bf16.mxu0 %v3304_v17 }
 0x3ed   :  { %3017 = vmatmul.mubr.bf16.gmra.mxu0 %v3593_v18 }
 0x3ee   :  { %3020 = vmatprep.mubr.bf16.mxu0 %v3595_v19  ;;  %1236 = vmatpush1.bf16.msra.mxu0 %v3302_v20 }
 0x3ef   :  { %1237 = vmatprep.subr.bf16.mxu0 %v3307_v22 }
 0x3f2   :  { %1238 = vmatpush1.bf16.msra.mxu0 %v3305_v23 }
 0x3f3   :  { %1239 = vmatprep.subr.bf16.mxu0 %v3310_v24 }
 0x3f5   :  { %3021 = vmatmul.mubr.bf16.gmra.mxu0 %v3599_v21 }
 0x3f6   :  { %1259 = vmatprep.mubr.bf16.mxu0 %v3494_v34  ;;  %1240 = vmatpush1.bf16.msra.mxu0 %v3308_v25 }
 0x3f7   :  { %1241 = vmatprep.subr.bf16.mxu0 %v3313_v26 }
 0x3fa   :  { %1242 = vmatpush1.bf16.msra.mxu0 %v3311_v27 }
 0x49d   :  { %v3010_v29 = vpop.f32.mrf.mxu0 }
 0x49e   :  { %v1032_v52 = vadd.f32 %v3010_v29, %v3555_v36 }
 0x49f   :  { %v1023_v31 = vpop.f32.mrf.mxu0 }
 0x4a0   :  { %v1024_v32 = vadd.f32 %v1023_v31, %v3551_v30  ;;  %v1093_v63 = vadd.f32 %v3604_v37, %v1032_v52  ;;  %v930_v52 = vpop.f32.mrf.mxu1 }
 0x4a1   :  { %v3011_v35 = vpop.f32.mrf.mxu0 }
 0x4a2   :  { %v1091_v40 = vadd.f32 %v3604_v37, %v1024_v32  ;;  %v1035_v46 = vadd.f32 %v3011_v35, %v3557_v39  ;;  %v1109_v1 = vmax.f32 %v1093_v63, 0.0 }
 0x4a3   :  { %v1026_v38 = vpop.f32.mrf.mxu0 }
 0x4a4   :  { %v1027_v42 = vadd.f32 %v1026_v38, %v3553_v33  ;;  %v1107_v54 = vmax.f32 %v1091_v40, 0.0  ;;  %v1094_v30 = vadd.f32 %v3604_v37, %v1035_v46 }
 0x4a5   :  { %v3014_v44 = vpop.f32.mrf.mxu0 }
 0x4a6   :  { %v1092_v48 = vadd.f32 %v3604_v37, %v1027_v42  ;;  %v1110_v33 = vmax.f32 %v1094_v30, 0.0  ;;  %v1048_v11 = vadd.f32 %v3014_v44, %v3563_v45 }
 0x4a7   :  { %v1039_v50 = vpop.f32.mrf.mxu0 }
 0x4a8   :  { %v1108_v56 = vmax.f32 %v1092_v48, 0.0  ;;  %v1040_v2 = vadd.f32 %v1039_v50, %v3559_v41  ;;  %v1140_v3 = vpack.c.bf16 %v1110_v33, %v1109_v1  ;;  %v1097_v16 = vadd.f32 %v3604_v37, %v1048_v11 }
 0x4a9   :  { %v3015_v58 = vpop.f32.mrf.mxu0 }
 0x4aa   :  { %v1139_v60 = vpack.c.bf16 %v1108_v56, %v1107_v54  ;;  %v1095_v5 = vadd.f32 %v3604_v37, %v1040_v2  ;;  %v1051_v8 = vadd.f32 %v3015_v58, %v3565_v47  ;;  %v1113_v23 = vmax.f32 %v1097_v16, 0.0 }
 0x4ab   :  { %v1042_v62 = vpop.f32.mrf.mxu0 }
 0x4ac   :  { %1260 = vmatmul.mubr.bf16.vlgmr.msra.gmra.mxu0 %v1139_v60  ;;  %v1043_v39 = vadd.f32 %v1042_v62, %v3561_v43  ;;  %v1111_v43 = vmax.f32 %v1095_v5, 0.0  ;;  %v1098_v14 = vadd.f32 %v3604_v37, %v1051_v8 }
 0x4ad   :  { %1269 = vmatprep.mubr.bf16.mxu0 %v3494_v34  ;;  %v3018_v0 = vpop.f32.mrf.mxu0 }
 0x4ae   :  { %v1096_v36 = vadd.f32 %v3604_v37, %v1043_v39  ;;  %v1114_v17 = vmax.f32 %v1098_v14, 0.0  ;;  %v1064_v32 = vadd.f32 %v3018_v0, %v3571_v53 }
 0x4af   :  { %v1055_v4 = vpop.f32.mrf.mxu0 }
 0x4b0   :  { %v1112_v9 = vmax.f32 %v1096_v36, 0.0  ;;  %v1056_v47 = vadd.f32 %v1055_v4, %v3567_v49  ;;  %v1142_v45 = vpack.c.bf16 %v1114_v17, %v1113_v23  ;;  %v1101_v40 = vadd.f32 %v3604_v37, %v1064_v32 }
 0x4b1   :  { %v3019_v10 = vpop.f32.mrf.mxu0 }
 0x4b2   :  { %v1141_v15 = vpack.c.bf16 %v1112_v9, %v1111_v43  ;;  %v1099_v26 = vadd.f32 %v3604_v37, %v1056_v47  ;;  %v1067_v27 = vadd.f32 %v3019_v10, %v3573_v55  ;;  %v1117_v46 = vmax.f32 %v1101_v40, 0.0 }
 0x4b3   :  { %v1058_v41 = vpop.f32.mrf.mxu0 }
 0x4b4   :  { %1270 = vmatmul.mubr.bf16.gmra.mxu0 %v1140_v3  ;;  %v1059_v20 = vadd.f32 %v1058_v41, %v3569_v51  ;;  %v1115_v51 = vmax.f32 %v1099_v26, 0.0  ;;  %v1102_v35 = vadd.f32 %v3604_v37, %v1067_v27 }
 0x4b5   :  { %1279 = vmatprep.mubr.bf16.mxu0 %v3494_v34  ;;  %v3022_v22 = vpop.f32.mrf.mxu0 }
 0x4b6   :  { %v1100_v24 = vadd.f32 %v3604_v37, %v1059_v20  ;;  %v1118_v42 = vmax.f32 %v1102_v35, 0.0  ;;  %v1080_v58 = vadd.f32 %v3022_v22, %v3579_v61 }
 0x4b7   :  { %v1071_v25 = vpop.f32.mrf.mxu0 }
 0x4b8   :  { %v1116_v29 = vmax.f32 %v1100_v24, 0.0  ;;  %v1072_v55 = vadd.f32 %v1071_v25, %v3575_v57  ;;  %v1144_v50 = vpack.c.bf16 %v1118_v42, %v1117_v46  ;;  %v1105_v62 = vadd.f32 %v3604_v37, %v1080_v58  ;;  %v3314_v46 = vld [vmem:[#allocation7 + $0x2f0] ss:$8 sps:$4 sm:$0xff]  }
 0x4b9   :  { %v3023_v31 = vpop.f32.mrf.mxu0  ;;  %v3326_v58 = vld [vmem:[#allocation7 + $0x2b0] ss:$8 sps:$4 sm:$0xff]  }
 0x4ba   :  { %v1143_v38 = vpack.c.bf16 %v1116_v29, %v1115_v51  ;;  %v1103_v53 = vadd.f32 %v3604_v37, %v1072_v55  ;;  %v1083_v54 = vadd.f32 %v3023_v31, %v930_v52  ;;  %v1121_v63 = vmax.f32 %v1105_v62, 0.0  ;;  %v3319_v55 = vld [vmem:[#allocation7 + $0x2e4] ss:$8 sps:$4 sm:$0xff]   ;;  %v3332_v62 = vld [vmem:[#allocation7 + $0x290] ss:$8 sps:$4 sm:$0xff]  }
 0x4bb   :  { %v1074_v49 = vpop.f32.mrf.mxu0  ;;  %v3325_v52 = vld [vmem:[#allocation7 + $0x2c4] ss:$8 sps:$4 sm:$0xff]  }
 0x4bc   :  { %1280 = vmatmul.mubr.bf16.gmra.mxu0 %v1141_v15  ;;  %v1075_v44 = vadd.f32 %v1074_v49, %v3577_v59  ;;  %v1119_v30 = vmax.f32 %v1103_v53, 0.0  ;;  %v1106_v60 = vadd.f32 %v3604_v37, %v1083_v54  ;;  %v3320_v53 = vld [vmem:[#allocation7 + $0x2d0] ss:$8 sps:$4 sm:$0xff]   ;;  %v3323_v54 = vld [vmem:[#allocation7 + $0x2c0] ss:$8 sps:$4 sm:$0xff]  }
 0x4bd   :  { %1289 = vmatprep.mubr.bf16.mxu0 %v3494_v34 }
 0x4be   :  { %v1104_v48 = vadd.f32 %v3604_v37, %v1075_v44  ;;  %v1122_v57 = vmax.f32 %v1106_v60, 0.0  ;;  %v3316_v44 = vld [vmem:[#allocation7 + $0x2f4] ss:$8 sps:$4 sm:$0xff]   ;;  %v3329_v60 = vld [vmem:[#allocation7 + $0x2a0] ss:$8 sps:$4 sm:$0xff]  }
 0x4c0   :  { %v1120_v56 = vmax.f32 %v1104_v48, 0.0  ;;  %v1146_v33 = vpack.c.bf16 %v1122_v57, %v1121_v63  ;;  %v3317_v48 = vld [vmem:[#allocation7 + $0x2e0] ss:$8 sps:$4 sm:$0xff]   ;;  %v3337_v57 = vld [vmem:[#allocation7 + $0x284] ss:$8 sps:$4 sm:$0xff]  }
 0x4c1   :  { %v3335_v63 = vld [vmem:[#allocation7 + $0x280] ss:$8 sps:$4 sm:$0xff]  }
 0x4c2   :  { %v1145_v59 = vpack.c.bf16 %v1120_v56, %v1119_v30  ;;  %v3328_v56 = vld [vmem:[#allocation7 + $0x2b4] ss:$8 sps:$4 sm:$0xff]   ;;  %v3331_v30 = vld [vmem:[#allocation7 + $0x2a4] ss:$8 sps:$4 sm:$0xff]  }
 0x4c4   :  { %1290 = vmatmul.mubr.bf16.gmra.mxu0 %v1142_v45 }
 0x4c5   :  { %1299 = vmatprep.mubr.bf16.mxu0 %v3494_v34 }
 0x4cc   :  { %1300 = vmatmul.mubr.bf16.gmra.mxu0 %v1143_v38 }
 0x4cd   :  { %1309 = vmatprep.mubr.bf16.mxu0 %v3494_v34 }
 0x4d4   :  { %1310 = vmatmul.mubr.bf16.gmra.mxu0 %v1144_v50  ;;  %v3322_v50 = vld [vmem:[#allocation7 + $0x2d4] ss:$8 sps:$4 sm:$0xff]  }
 0x4d5   :  { %1319 = vmatprep.mubr.bf16.mxu0 %v3494_v34 }
 0x4dc   :  { %1320 = vmatmul.mubr.bf16.gmra.mxu0 %v1145_v59  ;;  %v3334_v59 = vld [vmem:[#allocation7 + $0x294] ss:$8 sps:$4 sm:$0xff]  }
 0x4dd   :  { %1329 = vmatprep.mubr.bf16.mxu0 %v3494_v34 }
 0x4e4   :  { %1330 = vmatmul.mubr.bf16.gmra.mxu0 %v1146_v33 }
 0x4e5   :  { %3072 = vmatprep.mubr.bf16.mxu0 %v3547_v28 }
 0x56c   :  { %v1261_v39 = vpop.f32.mrf.mxu0 }
 0x56e   :  { %v3644_v0 = vpop.f32.mrf.mxu0 }
 0x570   :  { %v1265_v1 = vpop.f32.mrf.mxu0 }
 0x571   :  { %v1340_v61 = vpack.c.bf16 %v1265_v1, %v1261_v39 }
 0x572   :  { %v3646_v2 = vpop.f32.mrf.mxu0 }
 0x574   :  { %v1271_v36 = vpop.f32.mrf.mxu0 }
 0x576   :  { %v3648_v3 = vpop.f32.mrf.mxu0 }
 0x578   :  { %v1275_v37 = vpop.f32.mrf.mxu0 }
 0x579   :  { %v1341_v4 = vpack.c.bf16 %v1275_v37, %v1271_v36  ;;  %v3683_v36 = vld [vmem:[#allocation8 + $0x4] ss:$0 sm:$0xff] }
 0x57a   :  { %v3650_v5 = vpop.f32.mrf.mxu0 }
 0x57c   :  { %v1281_v8 = vpop.f32.mrf.mxu0 }
 0x57e   :  { %v3652_v9 = vpop.f32.mrf.mxu0 }
 0x580   :  { %v1285_v10 = vpop.f32.mrf.mxu0 }
 0x581   :  { %v1342_v42 = vpack.c.bf16 %v1285_v10, %v1281_v8 }
 0x582   :  { %v3654_v11 = vpop.f32.mrf.mxu0 }
 0x584   :  { %v1291_v28 = vpop.f32.mrf.mxu0 }
 0x586   :  { %v3656_v43 = vpop.f32.mrf.mxu0 }
 0x588   :  { %v1295_v14 = vpop.f32.mrf.mxu0 }
 0x589   :  { %v1343_v40 = vpack.c.bf16 %v1295_v14, %v1291_v28 }
 0x58a   :  { %v3658_v15 = vpop.f32.mrf.mxu0 }
 0x58c   :  { %v1301_v41 = vpop.f32.mrf.mxu0 }
 0x58e   :  { %v3660_v16 = vpop.f32.mrf.mxu0 }
 0x590   :  { %v1305_v17 = vpop.f32.mrf.mxu0 }
 0x591   :  { %v1344_v49 = vpack.c.bf16 %v1305_v17, %v1301_v41 }
 0x592   :  { %v3662_v20 = vpop.f32.mrf.mxu0 }
 0x594   :  { %v1311_v22 = vpop.f32.mrf.mxu0 }
 0x596   :  { %v3664_v23 = vpop.f32.mrf.mxu0 }
 0x598   :  { %v1315_v47 = vpop.f32.mrf.mxu0 }
 0x599   :  { %v1345_v38 = vpack.c.bf16 %v1315_v47, %v1311_v22 }
 0x59a   :  { %v3666_v24 = vpop.f32.mrf.mxu0 }
 0x59c   :  { %v1321_v45 = vpop.f32.mrf.mxu0 }
 0x59e   :  { %v3668_v25 = vpop.f32.mrf.mxu0 }
 0x5a0   :  { %v1325_v26 = vpop.f32.mrf.mxu0 }
 0x5a1   :  { %v1346_v35 = vpack.c.bf16 %v1325_v26, %v1321_v45 }
 0x5a2   :  { %v3670_v27 = vpop.f32.mrf.mxu0 }
 0x5a4   :  { %v1331_v29 = vpop.f32.mrf.mxu0 }
 0x5a6   :  { %v3672_v31 = vpop.f32.mrf.mxu0 }
 0x5a8   :  { %v1335_v32 = vpop.f32.mrf.mxu0 }
 0x5a9   :  { %v1347_v51 = vpack.c.bf16 %v1335_v32, %v1331_v29 }
 0x5ab   :  { %3024 = vmatprep.subr.bf16.mxu1 %v1347_v51 }
 0x5ac   :  { %3025 = vmatpush3.bf16.msra.mxu1 %v1347_v51 }
 0x5ad   :  { %3026 = vmatprep.subr.bf16.mxu1 %v1346_v35 }
 0x5b0   :  { %3027 = vmatpush3.bf16.msra.mxu1 %v1346_v35 }
 0x5b1   :  { %3028 = vmatprep.subr.bf16.mxu1 %v1345_v38 }
 0x5b4   :  { %3029 = vmatpush3.bf16.msra.mxu1 %v1345_v38 }
 0x5b5   :  { %3030 = vmatprep.subr.bf16.mxu1 %v1344_v49 }
 0x5b8   :  { %3031 = vmatpush3.bf16.msra.mxu1 %v1344_v49 }
 0x5b9   :  { %3032 = vmatprep.subr.bf16.mxu1 %v1343_v40 }
 0x5bc   :  { %3033 = vmatpush3.bf16.msra.mxu1 %v1343_v40 }
 0x5bd   :  { %3034 = vmatprep.subr.bf16.mxu1 %v1342_v42 }
 0x5c0   :  { %3035 = vmatpush3.bf16.msra.mxu1 %v1342_v42 }
 0x5c1   :  { %3036 = vmatprep.subr.bf16.mxu1 %v1341_v4 }
 0x5c4   :  { %3037 = vmatpush3.bf16.msra.mxu1 %v1341_v4 }
 0x5c5   :  { %3038 = vmatprep.subr.bf16.mxu1 %v1340_v61 }
 0x5c8   :  { %3039 = vmatpush3.bf16.msra.mxu1 %v1340_v61 }
 0x5c9   :  { %1586 = vmatprep.subr.bf16.mxu1 %v3316_v44 }
 0x5cb   :  { %3041 = vmatmul.mubr.bf16.vlgmr.msra.gmra.mxu1 %v3581_v6 }
 0x5cc   :  { %3044 = vmatprep.mubr.bf16.mxu1 %v3583_v7  ;;  %1587 = vmatpush1.bf16.msra.mxu1 %v3314_v46 }
 0x5cd   :  { %1588 = vmatprep.subr.bf16.mxu1 %v3319_v55 }
 0x5d0   :  { %1589 = vmatpush1.bf16.msra.mxu1 %v3317_v48 }
 0x5d1   :  { %1590 = vmatprep.subr.bf16.mxu1 %v3322_v50 }
 0x5d3   :  { %3045 = vmatmul.mubr.bf16.gmra.mxu1 %v3587_v12 }
 0x5d4   :  { %3048 = vmatprep.mubr.bf16.mxu1 %v3589_v13  ;;  %1591 = vmatpush1.bf16.msra.mxu1 %v3320_v53 }
 0x5d5   :  { %1592 = vmatprep.subr.bf16.mxu1 %v3325_v52 }
 0x5d8   :  { %1593 = vmatpush1.bf16.msra.mxu1 %v3323_v54 }
 0x5d9   :  { %1594 = vmatprep.subr.bf16.mxu1 %v3328_v56 }
 0x5db   :  { %3049 = vmatmul.mubr.bf16.gmra.mxu1 %v3593_v18 }
 0x5dc   :  { %3052 = vmatprep.mubr.bf16.mxu1 %v3595_v19  ;;  %1595 = vmatpush1.bf16.msra.mxu1 %v3326_v58 }
 0x5dd   :  { %1596 = vmatprep.subr.bf16.mxu1 %v3331_v30 }
 0x5e0   :  { %1597 = vmatpush1.bf16.msra.mxu1 %v3329_v60 }
 0x5e1   :  { %1598 = vmatprep.subr.bf16.mxu1 %v3334_v59 }
 0x5e3   :  { %3053 = vmatmul.mubr.bf16.gmra.mxu1 %v3599_v21 }
 0x5e4   :  { %1618 = vmatprep.mubr.bf16.mxu1 %v3494_v34  ;;  %1599 = vmatpush1.bf16.msra.mxu1 %v3332_v62 }
 0x5e5   :  { %1600 = vmatprep.subr.bf16.mxu1 %v3337_v57 }
 0x5e8   :  { %1601 = vmatpush1.bf16.msra.mxu1 %v3335_v63 }
 0x68b   :  { %v3042_v33 = vpop.f32.mrf.mxu1 }
 0x68c   :  { %v1391_v17 = vadd.f32 %v3042_v33, %v3648_v3 }
 0x68d   :  { %v1382_v39 = vpop.f32.mrf.mxu1 }
 0x68e   :  { %v1383_v1 = vadd.f32 %v1382_v39, %v3644_v0  ;;  %v1452_v32 = vadd.f32 %v3683_v36, %v1391_v17 }
 0x68f   :  { %v3043_v61 = vpop.f32.mrf.mxu1 }
 0x690   :  { %v1450_v4 = vadd.f32 %v3683_v36, %v1383_v1  ;;  %v1394_v28 = vadd.f32 %v3043_v61, %v3650_v5  ;;  %v1468_v35 = vmax.f32 %v1452_v32, 0.0 }
 0x691   :  { %v1385_v37 = vpop.f32.mrf.mxu1 }
 0x692   :  { %v1386_v8 = vadd.f32 %v1385_v37, %v3646_v2  ;;  %v1466_v22 = vmax.f32 %v1450_v4, 0.0  ;;  %v1453_v0 = vadd.f32 %v3683_v36, %v1394_v28 }
 0x693   :  { %v3046_v10 = vpop.f32.mrf.mxu1 }
 0x694   :  { %v1451_v14 = vadd.f32 %v3683_v36, %v1386_v8  ;;  %v1469_v2 = vmax.f32 %v1453_v0, 0.0  ;;  %v1407_v48 = vadd.f32 %v3046_v10, %v3656_v43 }
 0x695   :  { %v1398_v41 = vpop.f32.mrf.mxu1 }
 0x696   :  { %v1467_v47 = vmax.f32 %v1451_v14, 0.0  ;;  %v1399_v38 = vadd.f32 %v1398_v41, %v3652_v9  ;;  %v1499_v49 = vpack.c.bf16 %v1469_v2, %v1468_v35  ;;  %v1456_v52 = vadd.f32 %v3683_v36, %v1407_v48  ;;  %v1337_v41 = vpop.f32.mrf.mxu0  ;;  %v3339_v2 = vld [vmem:[#allocation7 + $0x370] ss:$8 sps:$4 sm:$0xff]  }
 0x697   :  { %v3047_v45 = vpop.f32.mrf.mxu1  ;;  %3120 = vmatprep.subr.bf16.mxu1 %v3339_v2 }
 0x698   :  { %v1498_v26 = vpack.c.bf16 %v1467_v47, %v1466_v22  ;;  %v1454_v42 = vadd.f32 %v3683_v36, %v1399_v38  ;;  %v1410_v44 = vadd.f32 %v3047_v45, %v3658_v15  ;;  %v1472_v30 = vmax.f32 %v1456_v52, 0.0 }
 0x699   :  { %v1401_v29 = vpop.f32.mrf.mxu1 }
 0x69a   :  { %1619 = vmatmul.mubr.bf16.vlgmr.msra.gmra.mxu1 %v1498_v26  ;;  %v1402_v5 = vadd.f32 %v1401_v29, %v3654_v11  ;;  %v1470_v11 = vmax.f32 %v1454_v42, 0.0  ;;  %v1457_v50 = vadd.f32 %v3683_v36, %v1410_v44 }
 0x69b   :  { %1628 = vmatprep.mubr.bf16.mxu1 %v3494_v34  ;;  %v3050_v51 = vpop.f32.mrf.mxu1  ;;  %3121 = vmatpush3.bf16.msra.mxu1 %v3339_v2  ;;  %v3355_v2 = vld [vmem:[#allocation7 + $0x460] ss:$8 sps:$4 sm:$0xff]  }
 0x69c   :  { %v1455_v3 = vadd.f32 %v3683_v36, %v1402_v5  ;;  %v1473_v54 = vmax.f32 %v1457_v50, 0.0  ;;  %v1423_v39 = vadd.f32 %v3050_v51, %v3664_v23  ;;  %v3341_v5 = vld [vmem:[#allocation7 + $0x360] ss:$8 sps:$4 sm:$0xff]   ;;  %v3343_v51 = vld [vmem:[#allocation7 + $0x350] ss:$8 sps:$4 sm:$0xff]  }
 0x69d   :  { %v1414_v40 = vpop.f32.mrf.mxu1  ;;  %3122 = vmatprep.subr.bf16.mxu1 %v3341_v5 }
 0x69e   :  { %v1471_v46 = vmax.f32 %v1455_v3, 0.0  ;;  %v1415_v15 = vadd.f32 %v1414_v40, %v3660_v16  ;;  %v1501_v43 = vpack.c.bf16 %v1473_v54, %v1472_v30  ;;  %v1460_v37 = vadd.f32 %v3683_v36, %v1423_v39 }
 0x69f   :  { %v3051_v55 = vpop.f32.mrf.mxu1  ;;  %3123 = vmatpush3.bf16.msra.mxu1 %v3341_v5  ;;  %v3356_v5 = vld [vmem:[#allocation7 + $0x450] ss:$8 sps:$4 sm:$0xff]  }
 0x6a0   :  { %v1500_v53 = vpack.c.bf16 %v1471_v46, %v1470_v11  ;;  %v1458_v62 = vadd.f32 %v3683_v36, %v1415_v15  ;;  %v1426_v57 = vadd.f32 %v3051_v55, %v3666_v24  ;;  %v1476_v10 = vmax.f32 %v1460_v37, 0.0  ;;  %3124 = vmatprep.subr.bf16.mxu1 %v3343_v51 }
 0x6a1   :  { %v1417_v9 = vpop.f32.mrf.mxu1 }
 0x6a2   :  { %1629 = vmatmul.mubr.bf16.gmra.mxu1 %v1499_v49  ;;  %v1418_v56 = vadd.f32 %v1417_v9, %v3662_v20  ;;  %v1474_v20 = vmax.f32 %v1458_v62, 0.0  ;;  %v1461_v1 = vadd.f32 %v3683_v36, %v1426_v57 }
 0x6a3   :  { %1638 = vmatprep.mubr.bf16.mxu1 %v3494_v34  ;;  %v3054_v58 = vpop.f32.mrf.mxu1  ;;  %3125 = vmatpush3.bf16.msra.mxu1 %v3343_v51  ;;  %v3357_v51 = vld [vmem:[#allocation7 + $0x440] ss:$8 sps:$4 sm:$0xff]  }
 0x6a4   :  { %v1459_v60 = vadd.f32 %v3683_v36, %v1418_v56  ;;  %v1477_v4 = vmax.f32 %v1461_v1, 0.0  ;;  %v1439_v47 = vadd.f32 %v3054_v58, %v3672_v31  ;;  %v3345_v31 = vld [vmem:[#allocation7 + $0x340] ss:$8 sps:$4 sm:$0xff]  }
 0x6a5   :  { %v1430_v59 = vpop.f32.mrf.mxu1  ;;  %3126 = vmatprep.subr.bf16.mxu1 %v3345_v31 }
 0x6a6   :  { %v1475_v63 = vmax.f32 %v1459_v60, 0.0  ;;  %v1431_v24 = vadd.f32 %v1430_v59, %v3668_v25  ;;  %v1503_v14 = vpack.c.bf16 %v1477_v4, %v1476_v10  ;;  %v1464_v26 = vadd.f32 %v3683_v36, %v1439_v47  ;;  %v3371_v47 = vld [vmem:[#allocation2 + $0x8] sm:$0xff]  }
 0x6a7   :  { %v3055_v33 = vpop.f32.mrf.mxu1  ;;  %3127 = vmatpush3.bf16.msra.mxu1 %v3345_v31 }
 0x6a8   :  { %v1502_v61 = vpack.c.bf16 %v1475_v63, %v1474_v20  ;;  %v1462_v23 = vadd.f32 %v3683_v36, %v1431_v24  ;;  %v1442_v17 = vadd.f32 %v3055_v33, %v1337_v41  ;;  %v1480_v29 = vmax.f32 %v1464_v26, 0.0  ;;  %v3344_v41 = vld [vmem:[#allocation7 + $0x3c0] ss:$8 sps:$4 sm:$0xff]  }
 0x6a9   :  { %v1433_v16 = vpop.f32.mrf.mxu1  ;;  %v3375_v26 = vld [vmem:[#allocation2 + $0x28] sm:$0xff]  }
 0x6aa   :  { %1639 = vmatmul.mubr.bf16.gmra.mxu1 %v1500_v53  ;;  %v1434_v8 = vadd.f32 %v1433_v16, %v3670_v27  ;;  %v1478_v45 = vmax.f32 %v1462_v23, 0.0  ;;  %v1465_v0 = vadd.f32 %v3683_v36, %v1442_v17  ;;  %v3342_v23 = vld [vmem:[#allocation7 + $0x3d0] ss:$8 sps:$4 sm:$0xff]   ;;  %v3348_v17 = vld [vmem:[#allocation7 + $0x3a0] ss:$8 sps:$4 sm:$0xff]  }
 0x6ab   :  { %1648 = vmatprep.mubr.bf16.mxu1 %v3494_v34 }
 0x6ac   :  { %v1463_v28 = vadd.f32 %v3683_v36, %v1434_v8  ;;  %v1481_v25 = vmax.f32 %v1465_v0, 0.0  ;;  %v3373_v0 = vld [vmem:[#allocation2 + $0x18] sm:$0xff]  }
 0x6ae   :  { %v1479_v22 = vmax.f32 %v1463_v28, 0.0  ;;  %v1505_v32 = vpack.c.bf16 %v1481_v25, %v1480_v29  ;;  %v3338_v28 = vld [vmem:[#allocation7 + $0x3f0] ss:$8 sps:$4 sm:$0xff]  }
 0x6af   :  { %v3376_v25 = vld [vmem:[#allocation2 + $0x30] sm:$0xff]   ;;  %v3377_v29 = vld [vmem:[#allocation2 + $0x38] sm:$0xff]  }
 0x6b0   :  { %v1504_v27 = vpack.c.bf16 %v1479_v22, %v1478_v45  ;;  %v3347_v22 = vld [vmem:[#allocation7 + $0x330] ss:$8 sps:$4 sm:$0xff]  }
 0x6b1   :  { %3128 = vmatprep.subr.bf16.mxu1 %v3347_v22  ;;  %v3372_v45 = vld [vmem:[#allocation2 + $0x10] sm:$0xff]  }
 0x6b2   :  { %1649 = vmatmul.mubr.bf16.gmra.mxu1 %v1501_v43 }
 0x6b3   :  { %1658 = vmatprep.mubr.bf16.mxu1 %v3494_v34  ;;  %3129 = vmatpush3.bf16.msra.mxu1 %v3347_v22 }
 0x6ba   :  { %1659 = vmatmul.mubr.bf16.gmra.mxu1 %v1502_v61 }
 0x6bb   :  { %1668 = vmatprep.mubr.bf16.mxu1 %v3494_v34 }
 0x6c2   :  { %1669 = vmatmul.mubr.bf16.gmra.mxu1 %v1503_v14  ;;  %v3340_v14 = vld [vmem:[#allocation7 + $0x3e0] ss:$8 sps:$4 sm:$0xff]  }
 0x6c3   :  { %1678 = vmatprep.mubr.bf16.mxu1 %v3494_v34 }
 0x6ca   :  { %1679 = vmatmul.mubr.bf16.gmra.mxu1 %v1504_v27  ;;  %v3374_v27 = vld [vmem:[#allocation2 + $0x20] sm:$0xff]  }
 0x6cb   :  { %1688 = vmatprep.mubr.bf16.mxu1 %v3494_v34 }
 0x6d2   :  { %1689 = vmatmul.mubr.bf16.gmra.mxu1 %v1505_v32  ;;  %v3354_v32 = vld [vmem:[#allocation7 + $0x470] ss:$8 sps:$4 sm:$0xff]  }
 0x75a   :  { %v1620_v35 = vpop.f32.mrf.mxu1 }
 0x75c   :  { %v3722_v38 = vpop.f32.mrf.mxu1 }
 0x75e   :  { %v1624_v36 = vpop.f32.mrf.mxu1 }
 0x75f   :  { %v1699_v34 = vpack.c.bf16 %v1624_v36, %v1620_v35 }
 0x760   :  { %v3724_v3 = vpop.f32.mrf.mxu1 }
 0x762   :  { %v1630_v49 = vpop.f32.mrf.mxu1 }
 0x764   :  { %v3726_v40 = vpop.f32.mrf.mxu1 }
 0x766   :  { %v1634_v42 = vpop.f32.mrf.mxu1 }
 0x767   :  { %v1700_v44 = vpack.c.bf16 %v1634_v42, %v1630_v49  ;;  %v3761_v42 = vld [vmem:[#allocation8 + $0x5] ss:$0 sm:$0xff] }
 0x768   :  { %v3728_v46 = vpop.f32.mrf.mxu1 }
 0x76a   :  { %v1640_v55 = vpop.f32.mrf.mxu1 }
 0x76c   :  { %v3730_v48 = vpop.f32.mrf.mxu1 }
 0x76e   :  { %v1644_v11 = vpop.f32.mrf.mxu1 }
 0x76f   :  { %v1701_v24 = vpack.c.bf16 %v1644_v11, %v1640_v55 }
 0x770   :  { %v3732_v50 = vpop.f32.mrf.mxu1 }
 0x772   :  { %v1650_v53 = vpop.f32.mrf.mxu1 }
 0x774   :  { %v3734_v9 = vpop.f32.mrf.mxu1 }
 0x776   :  { %v1654_v52 = vpop.f32.mrf.mxu1 }
 0x777   :  { %v1702_v10 = vpack.c.bf16 %v1654_v52, %v1650_v53 }
 0x778   :  { %v3736_v54 = vpop.f32.mrf.mxu1 }
 0x77a   :  { %v1660_v56 = vpop.f32.mrf.mxu1 }
 0x77c   :  { %v3738_v58 = vpop.f32.mrf.mxu1 }
 0x77e   :  { %v1664_v30 = vpop.f32.mrf.mxu1 }
 0x77f   :  { %v1703_v8 = vpack.c.bf16 %v1664_v30, %v1660_v56 }
 0x780   :  { %v3740_v15 = vpop.f32.mrf.mxu1 }
 0x782   :  { %v1670_v60 = vpop.f32.mrf.mxu1 }
 0x784   :  { %v3742_v43 = vpop.f32.mrf.mxu1 }
 0x786   :  { %v1674_v59 = vpop.f32.mrf.mxu1 }
 0x787   :  { %v1704_v4 = vpack.c.bf16 %v1674_v59, %v1670_v60 }
 0x788   :  { %v3744_v62 = vpop.f32.mrf.mxu1 }
 0x78a   :  { %v1680_v57 = vpop.f32.mrf.mxu1 }
 0x78c   :  { %v3746_v63 = vpop.f32.mrf.mxu1 }
 0x78e   :  { %v1684_v33 = vpop.f32.mrf.mxu1 }
 0x78f   :  { %v1705_v37 = vpack.c.bf16 %v1684_v33, %v1680_v57 }
 0x790   :  { %v3748_v39 = vpop.f32.mrf.mxu1 }
 0x792   :  { %v1690_v20 = vpop.f32.mrf.mxu1 }
 0x794   :  { %v3750_v1 = vpop.f32.mrf.mxu1 }
 0x796   :  { %v1694_v61 = vpop.f32.mrf.mxu1 }
 0x797   :  { %v1706_v16 = vpack.c.bf16 %v1694_v61, %v1690_v20 }
 0x799   :  { %3056 = vmatprep.subr.bf16.mxu0 %v1706_v16 }
 0x79a   :  { %3057 = vmatpush3.bf16.msra.mxu0 %v1706_v16 }
 0x79b   :  { %3058 = vmatprep.subr.bf16.mxu0 %v1705_v37 }
 0x79e   :  { %3059 = vmatpush3.bf16.msra.mxu0 %v1705_v37 }
 0x79f   :  { %3060 = vmatprep.subr.bf16.mxu0 %v1704_v4 }
 0x7a2   :  { %3061 = vmatpush3.bf16.msra.mxu0 %v1704_v4 }
 0x7a3   :  { %3062 = vmatprep.subr.bf16.mxu0 %v1703_v8 }
 0x7a6   :  { %3063 = vmatpush3.bf16.msra.mxu0 %v1703_v8 }
 0x7a7   :  { %3064 = vmatprep.subr.bf16.mxu0 %v1702_v10 }
 0x7aa   :  { %3065 = vmatpush3.bf16.msra.mxu0 %v1702_v10 }
 0x7ab   :  { %3066 = vmatprep.subr.bf16.mxu0 %v1701_v24 }
 0x7ae   :  { %3067 = vmatpush3.bf16.msra.mxu0 %v1701_v24 }
 0x7af   :  { %3068 = vmatprep.subr.bf16.mxu0 %v1700_v44 }
 0x7b2   :  { %3069 = vmatpush3.bf16.msra.mxu0 %v1700_v44 }
 0x7b3   :  { %3070 = vmatprep.subr.bf16.mxu0 %v1699_v34 }
 0x7b6   :  { %3071 = vmatpush3.bf16.msra.mxu0 %v1699_v34 }
 0x7b7   :  { %3088 = vmatprep.subr.bf16.mxu0 %v3338_v28 }
 0x7b9   :  { %3073 = vmatmul.mubr.bf16.vlgmr.msra.gmra.mxu0 %v3581_v6  ;;  %v3370_v6 = vld [vmem:[#allocation2] sm:$0xff]  }
 0x7ba   :  { %3076 = vmatprep.mubr.bf16.mxu0 %v3583_v7  ;;  %3089 = vmatpush3.bf16.msra.mxu0 %v3338_v28  ;;  %v3346_v7 = vld [vmem:[#allocation7 + $0x3b0] ss:$8 sps:$4 sm:$0xff]  }
 0x7bb   :  { %3090 = vmatprep.subr.bf16.mxu0 %v3340_v14 }
 0x7be   :  { %3091 = vmatpush3.bf16.msra.mxu0 %v3340_v14 }
 0x7bf   :  { %3092 = vmatprep.subr.bf16.mxu0 %v3342_v23 }
 0x7c1   :  { %3077 = vmatmul.mubr.bf16.gmra.mxu0 %v3587_v12  ;;  %v3350_v12 = vld [vmem:[#allocation7 + $0x390] ss:$8 sps:$4 sm:$0xff]  }
 0x7c2   :  { %3080 = vmatprep.mubr.bf16.mxu0 %v3589_v13  ;;  %3093 = vmatpush3.bf16.msra.mxu0 %v3342_v23  ;;  %v3349_v13 = vld [vmem:[#allocation7 + $0x320] ss:$8 sps:$4 sm:$0xff]  }
 0x7c3   :  { %3094 = vmatprep.subr.bf16.mxu0 %v3344_v41  ;;  %3130 = vmatprep.subr.bf16.mxu1 %v3349_v13 }
 0x7c4   :  { %3131 = vmatpush3.bf16.msra.mxu1 %v3349_v13 }
 0x7c6   :  { %3095 = vmatpush3.bf16.msra.mxu0 %v3344_v41 }
 0x7c7   :  { %3096 = vmatprep.subr.bf16.mxu0 %v3346_v7 }
 0x7c9   :  { %3081 = vmatmul.mubr.bf16.gmra.mxu0 %v3593_v18  ;;  %v3352_v18 = vld [vmem:[#allocation7 + $0x380] ss:$8 sps:$4 sm:$0xff]  }
 0x7ca   :  { %3084 = vmatprep.mubr.bf16.mxu0 %v3595_v19  ;;  %3097 = vmatpush3.bf16.msra.mxu0 %v3346_v7  ;;  %v3351_v19 = vld [vmem:[#allocation7 + $0x310] ss:$8 sps:$4 sm:$0xff]  }
 0x7cb   :  { %3098 = vmatprep.subr.bf16.mxu0 %v3348_v17  ;;  %3132 = vmatprep.subr.bf16.mxu1 %v3351_v19 }
 0x7cc   :  { %3133 = vmatpush3.bf16.msra.mxu1 %v3351_v19 }
 0x7ce   :  { %3099 = vmatpush3.bf16.msra.mxu0 %v3348_v17 }
 0x7cf   :  { %3100 = vmatprep.subr.bf16.mxu0 %v3350_v12 }
 0x7d1   :  { %3085 = vmatmul.mubr.bf16.gmra.mxu0 %v3599_v21  ;;  %v3353_v21 = vld [vmem:[#allocation7 + $0x300] ss:$8 sps:$4 sm:$0xff]  }
 0x7d2   :  { %3104 = vmatprep.mubr.bf16.mxu0 %v3370_v6  ;;  %3101 = vmatpush3.bf16.msra.mxu0 %v3350_v12 }
 0x7d3   :  { %3102 = vmatprep.subr.bf16.mxu0 %v3352_v18  ;;  %3134 = vmatprep.subr.bf16.mxu1 %v3353_v21 }
 0x7d4   :  { %3135 = vmatpush3.bf16.msra.mxu1 %v3353_v21 }
 0x7d6   :  { %3103 = vmatpush3.bf16.msra.mxu0 %v3352_v18 }
 0x7d7   :  { %3152 = vmatprep.subr.bf16.mxu0 %v3354_v32 }
 0x7d9   :  { %3105 = vmatmul.mubr.bf16.vlgmr.msra.gmra.mxu0 %v3371_v47 }
 0x7da   :  { %3108 = vmatprep.mubr.bf16.mxu0 %v3372_v45  ;;  %3153 = vmatpush3.bf16.msra.mxu0 %v3354_v32 }
 0x7db   :  { %3154 = vmatprep.subr.bf16.mxu0 %v3355_v2 }
 0x7de   :  { %3155 = vmatpush3.bf16.msra.mxu0 %v3355_v2 }
 0x7df   :  { %3156 = vmatprep.subr.bf16.mxu0 %v3356_v5 }
 0x7e1   :  { %3109 = vmatmul.mubr.bf16.gmra.mxu0 %v3373_v0 }
 0x7e2   :  { %3112 = vmatprep.mubr.bf16.mxu0 %v3374_v27  ;;  %3157 = vmatpush3.bf16.msra.mxu0 %v3356_v5 }
 0x7e3   :  { %3158 = vmatprep.subr.bf16.mxu0 %v3357_v51 }
 0x7e6   :  { %3159 = vmatpush3.bf16.msra.mxu0 %v3357_v51 }
 0x7e9   :  { %3113 = vmatmul.mubr.bf16.gmra.mxu0 %v3375_v26 }
 0x7ea   :  { %3116 = vmatprep.mubr.bf16.mxu0 %v3376_v25 }
 0x7f1   :  { %3117 = vmatmul.mubr.bf16.gmra.mxu0 %v3377_v29  ;;  %v1696_v29 = vpop.f32.mrf.mxu1 }
 0x879   :  { %v3074_v31 = vpop.f32.mrf.mxu0 }
 0x87a   :  { %v1750_v34 = vadd.f32 %v3074_v31, %v3726_v40 }
 0x87b   :  { %v1741_v35 = vpop.f32.mrf.mxu0 }
 0x87c   :  { %v1742_v36 = vadd.f32 %v1741_v35, %v3722_v38  ;;  %v1811_v56 = vadd.f32 %v3761_v42, %v1750_v34 }
 0x87d   :  { %v3075_v49 = vpop.f32.mrf.mxu0 }
 0x87e   :  { %v1753_v44 = vadd.f32 %v3075_v49, %v3728_v46  ;;  %v1809_v11 = vadd.f32 %v3761_v42, %v1742_v36  ;;  %v1827_v20 = vmax.f32 %v1811_v56, 0.0 }
 0x87f   :  { %v1744_v55 = vpop.f32.mrf.mxu0 }
 0x880   :  { %v1812_v53 = vadd.f32 %v3761_v42, %v1753_v44  ;;  %v1745_v52 = vadd.f32 %v1744_v55, %v3724_v3  ;;  %v1825_v40 = vmax.f32 %v1809_v11, 0.0 }
 0x881   :  { %v3078_v30 = vpop.f32.mrf.mxu0 }
 0x882   :  { %v1810_v60 = vadd.f32 %v3761_v42, %v1745_v52  ;;  %v1828_v38 = vmax.f32 %v1812_v53, 0.0  ;;  %v1766_v46 = vadd.f32 %v3078_v30, %v3734_v9  ;;  %v3358_v30 = vld [vmem:[#allocation7 + $0x430] ss:$8 sps:$4 sm:$0xff]  }
 0x883   :  { %v1757_v59 = vpop.f32.mrf.mxu0  ;;  %3160 = vmatprep.subr.bf16.mxu0 %v3358_v30 }
 0x884   :  { %v1826_v57 = vmax.f32 %v1810_v60, 0.0  ;;  %v1758_v33 = vadd.f32 %v1757_v59, %v3730_v48  ;;  %v1858_v4 = vpack.c.bf16 %v1828_v38, %v1827_v20  ;;  %v1815_v28 = vadd.f32 %v3761_v42, %v1766_v46  ;;  %3161 = vmatpush3.bf16.msra.mxu0 %v3358_v30  ;;  %v3359_v60 = vld [vmem:[#allocation7 + $0x420] ss:$8 sps:$4 sm:$0xff]  }
 0x885   :  { %v3079_v61 = vpop.f32.mrf.mxu0  ;;  %3162 = vmatprep.subr.bf16.mxu0 %v3359_v60  ;;  %v3361_v38 = vld [vmem:[#allocation7 + $0x400] ss:$8 sps:$4 sm:$0xff]  }
 0x886   :  { %v1769_v16 = vadd.f32 %v3079_v61, %v3736_v54  ;;  %v1857_v37 = vpack.c.bf16 %v1826_v57, %v1825_v40  ;;  %v1813_v8 = vadd.f32 %v3761_v42, %v1758_v33  ;;  %v1831_v7 = vmax.f32 %v1815_v28, 0.0  ;;  %v3363_v59 = vld [vmem:[#allocation7 + $0x4e0] ss:$8 sps:$4 sm:$0xff]   ;;  %v3364_v40 = vld [vmem:[#allocation7 + $0x4d0] ss:$8 sps:$4 sm:$0xff]  }
 0x887   :  { %v1760_v3 = vpop.f32.mrf.mxu0  ;;  %v3365_v57 = vld [vmem:[#allocation7 + $0x4c0] ss:$8 sps:$4 sm:$0xff]   ;;  %v3366_v33 = vld [vmem:[#allocation7 + $0x4b0] ss:$8 sps:$4 sm:$0xff]  }
 0x888   :  { %v1816_v10 = vadd.f32 %v3761_v42, %v1769_v16  ;;  %v1761_v24 = vadd.f32 %v1760_v3, %v3732_v50  ;;  %3136 = vmatprep.mubr.bf16.mxu1 %v1857_v37  ;;  %v1829_v41 = vmax.f32 %v1813_v8, 0.0  ;;  %3163 = vmatpush3.bf16.msra.mxu0 %v3359_v60 }
 0x889   :  { %v3082_v14 = vpop.f32.mrf.mxu0  ;;  %3137 = vmatmul.mubr.bf16.vlgmr.msra.gmra.mxu1 %v1858_v4 }
 0x88a   :  { %v1814_v48 = vadd.f32 %v3761_v42, %v1761_v24  ;;  %v1832_v9 = vmax.f32 %v1816_v10, 0.0  ;;  %v1782_v17 = vadd.f32 %v3082_v14, %v3742_v43 }
 0x88b   :  { %v1773_v23 = vpop.f32.mrf.mxu0 }
 0x88c   :  { %v1830_v54 = vmax.f32 %v1814_v48, 0.0  ;;  %v1774_v6 = vadd.f32 %v1773_v23, %v3738_v58  ;;  %v1860_v18 = vpack.c.bf16 %v1832_v9, %v1831_v7  ;;  %v1819_v45 = vadd.f32 %v3761_v42, %v1782_v17  ;;  %v3792_v23 = vld [vmem:[#allocation8 + $0x6] ss:$0 sm:$0xff] }
 0x88d   :  { %v3083_v22 = vpop.f32.mrf.mxu0 }
 0x88e   :  { %v1785_v12 = vadd.f32 %v3083_v22, %v3744_v62  ;;  %v1859_v50 = vpack.c.bf16 %v1830_v54, %v1829_v41  ;;  %v1817_v19 = vadd.f32 %v3761_v42, %v1774_v6  ;;  %v1835_v32 = vmax.f32 %v1819_v45, 0.0 }
 0x88f   :  { %v1776_v13 = vpop.f32.mrf.mxu0 }
 0x890   :  { %v1820_v21 = vadd.f32 %v3761_v42, %v1785_v12  ;;  %v1777_v47 = vadd.f32 %v1776_v13, %v3740_v15  ;;  %3140 = vmatprep.mubr.bf16.mxu1 %v1859_v50  ;;  %v1833_v26 = vmax.f32 %v1817_v19, 0.0 }
 0x891   :  { %v3086_v0 = vpop.f32.mrf.mxu0  ;;  %3141 = vmatmul.mubr.bf16.gmra.mxu1 %v1860_v18 }
 0x892   :  { %v1818_v58 = vadd.f32 %v3761_v42, %v1777_v47  ;;  %v1836_v43 = vmax.f32 %v1820_v21, 0.0  ;;  %v1798_v2 = vadd.f32 %v3086_v0, %v3750_v1 }
 0x893   :  { %v1789_v27 = vpop.f32.mrf.mxu0 }
 0x894   :  { %v1834_v62 = vmax.f32 %v1818_v58, 0.0  ;;  %v1790_v25 = vadd.f32 %v1789_v27, %v3746_v63  ;;  %v1862_v35 = vpack.c.bf16 %v1836_v43, %v1835_v32  ;;  %v1823_v44 = vadd.f32 %v3761_v42, %v1798_v2 }
 0x895   :  { %v3087_v5 = vpop.f32.mrf.mxu0 }
 0x896   :  { %v1801_v51 = vadd.f32 %v3087_v5, %v1696_v29  ;;  %v1861_v15 = vpack.c.bf16 %v1834_v62, %v1833_v26  ;;  %v1821_v36 = vadd.f32 %v3761_v42, %v1790_v25  ;;  %v1839_v53 = vmax.f32 %v1823_v44, 0.0 }
 0x897   :  { %v1792_v31 = vpop.f32.mrf.mxu0 }
 0x898   :  { %v1824_v34 = vadd.f32 %v3761_v42, %v1801_v51  ;;  %v1793_v49 = vadd.f32 %v1792_v31, %v3748_v39  ;;  %3144 = vmatprep.mubr.bf16.mxu1 %v1861_v15  ;;  %v1837_v11 = vmax.f32 %v1821_v36, 0.0  ;;  %v3360_v39 = vld [vmem:[#allocation7 + $0x410] ss:$8 sps:$4 sm:$0xff]  }
 0x899   :  { %3145 = vmatmul.mubr.bf16.gmra.mxu1 %v1862_v35  ;;  %3164 = vmatprep.subr.bf16.mxu0 %v3360_v39  ;;  %v3106_v20 = vpop.f32.mrf.mxu0 }
 0x89a   :  { %v1822_v63 = vadd.f32 %v3761_v42, %v1793_v49  ;;  %v1840_v55 = vmax.f32 %v1824_v34, 0.0  ;;  %3165 = vmatpush3.bf16.msra.mxu0 %v3360_v39  ;;  %v3362_v42 = vld [vmem:[#allocation7 + $0x4f0] ss:$8 sps:$4 sm:$0xff]  }
 0x89b   :  { %3166 = vmatprep.subr.bf16.mxu0 %v3361_v38  ;;  %3184 = vmatprep.subr.bf16.mxu1 %v3362_v42  ;;  %v1963_v46 = vpop.f32.mrf.mxu0 }
 0x89c   :  { %v1838_v1 = vmax.f32 %v1822_v63, 0.0  ;;  %v1864_v56 = vpack.c.bf16 %v1840_v55, %v1839_v53  ;;  %3185 = vmatpush3.bf16.msra.mxu1 %v3362_v42 }
 0x89d   :  { %3186 = vmatprep.subr.bf16.mxu1 %v3363_v59  ;;  %v3107_v61 = vpop.f32.mrf.mxu0 }
 0x89e   :  { %v1863_v52 = vpack.c.bf16 %v1838_v1, %v1837_v11  ;;  %3167 = vmatpush3.bf16.msra.mxu0 %v3361_v38 }
 0x89f   :  { %v1966_v16 = vpop.f32.mrf.mxu0 }
 0x8a0   :  { %3148 = vmatprep.mubr.bf16.mxu1 %v1863_v52  ;;  %3187 = vmatpush3.bf16.msra.mxu1 %v3363_v59 }
 0x8a1   :  { %3149 = vmatmul.mubr.bf16.gmra.mxu1 %v1864_v56  ;;  %3188 = vmatprep.subr.bf16.mxu1 %v3364_v40  ;;  %v3110_v37 = vpop.f32.mrf.mxu0 }
 0x8a3   :  { %v1979_v4 = vpop.f32.mrf.mxu0 }
 0x8a4   :  { %3189 = vmatpush3.bf16.msra.mxu1 %v3364_v40 }
 0x8a5   :  { %3190 = vmatprep.subr.bf16.mxu1 %v3365_v57  ;;  %v3111_v3 = vpop.f32.mrf.mxu0 }
 0x8a7   :  { %v1982_v8 = vpop.f32.mrf.mxu0 }
 0x8a8   :  { %3191 = vmatpush3.bf16.msra.mxu1 %v3365_v57 }
 0x8a9   :  { %3192 = vmatprep.subr.bf16.mxu1 %v3366_v33  ;;  %v3114_v28 = vpop.f32.mrf.mxu0 }
 0x8ab   :  { %v1995_v6 = vpop.f32.mrf.mxu0 }
 0x8ac   :  { %3193 = vmatpush3.bf16.msra.mxu1 %v3366_v33 }
 0x8ad   :  { %v3115_v21 = vpop.f32.mrf.mxu0 }
 0x8af   :  { %v1998_v32 = vpop.f32.mrf.mxu0 }
 0x8b1   :  { %v3118_v49 = vpop.f32.mrf.mxu0 }
 0x8b3   :  { %v2011_v39 = vpop.f32.mrf.mxu0 }
 0x949   :  { %v3138_v10 = vpop.f32.mrf.mxu1 }
 0x94a   :  { %v2117_v48 = vadd.f32 %v3138_v10, %v3106_v20 }
 0x94b   :  { %v2108_v24 = vpop.f32.mrf.mxu1 }
 0x94c   :  { %v2109_v14 = vadd.f32 %v2108_v24, %v1963_v46  ;;  %v2178_v12 = vadd.f32 %v3792_v23, %v2117_v48 }
 0x94d   :  { %v3139_v9 = vpop.f32.mrf.mxu1 }
 0x94e   :  { %v2120_v41 = vadd.f32 %v3139_v9, %v3107_v61  ;;  %v2176_v7 = vadd.f32 %v3792_v23, %v2109_v14  ;;  %v2194_v58 = vmax.f32 %v2178_v12, 0.0  ;;  %v3119_v61 = vpop.f32.mrf.mxu0 }
 0x94f   :  { %v2111_v54 = vpop.f32.mrf.mxu1 }
 0x950   :  { %v2179_v17 = vadd.f32 %v3792_v23, %v2120_v41  ;;  %v2112_v22 = vadd.f32 %v2111_v54, %v1966_v16  ;;  %v2192_v47 = vmax.f32 %v2176_v7, 0.0  ;;  %v2014_v48 = vpop.f32.mrf.mxu0 }
 0x951   :  { %v3142_v50 = vpop.f32.mrf.mxu1 }
 0x952   :  { %v2177_v13 = vadd.f32 %v3792_v23, %v2112_v22  ;;  %v2195_v18 = vmax.f32 %v2179_v17, 0.0  ;;  %v2133_v43 = vadd.f32 %v3142_v50, %v3110_v37 }
 0x953   :  { %v2124_v19 = vpop.f32.mrf.mxu1 }
 0x954   :  { %v2193_v45 = vmax.f32 %v2177_v13, 0.0  ;;  %v2125_v0 = vadd.f32 %v2124_v19, %v1979_v4  ;;  %v2225_v25 = vpack.c.bf16 %v2195_v18, %v2194_v58  ;;  %v2182_v15 = vadd.f32 %v3792_v23, %v2133_v43 }
 0x955   :  { %v3143_v27 = vpop.f32.mrf.mxu1 }
 0x956   :  { %v2136_v26 = vadd.f32 %v3143_v27, %v3111_v3  ;;  %v2224_v62 = vpack.c.bf16 %v2193_v45, %v2192_v47  ;;  %v2180_v2 = vadd.f32 %v3792_v23, %v2125_v0  ;;  %v2198_v11 = vmax.f32 %v2182_v15, 0.0  ;;  %v3368_v47 = vld [vmem:[#allocation7 + $0x490] ss:$8 sps:$4 sm:$0xff]   ;;  %v3369_v45 = vld [vmem:[#allocation7 + $0x480] ss:$8 sps:$4 sm:$0xff]  }
 0x957   :  { %v2127_v29 = vpop.f32.mrf.mxu1 }
 0x958   :  { %v2183_v5 = vadd.f32 %v3792_v23, %v2136_v26  ;;  %v2128_v51 = vadd.f32 %v2127_v29, %v1982_v8  ;;  %3168 = vmatprep.mubr.bf16.mxu0 %v2224_v62  ;;  %v2196_v44 = vmax.f32 %v2180_v2, 0.0 }
 0x959   :  { %v3146_v31 = vpop.f32.mrf.mxu1  ;;  %3169 = vmatmul.mubr.bf16.vlgmr.msra.gmra.mxu0 %v2225_v25 }
 0x95a   :  { %v2181_v35 = vadd.f32 %v3792_v23, %v2128_v51  ;;  %v2199_v36 = vmax.f32 %v2183_v5, 0.0  ;;  %v2149_v1 = vadd.f32 %v3146_v31, %v3114_v28 }
 0x95b   :  { %v2140_v34 = vpop.f32.mrf.mxu1 }
 0x95c   :  { %v2197_v63 = vmax.f32 %v2181_v35, 0.0  ;;  %v2141_v55 = vadd.f32 %v2140_v34, %v1995_v6  ;;  %v2227_v30 = vpack.c.bf16 %v2199_v36, %v2198_v11  ;;  %v2186_v40 = vadd.f32 %v3792_v23, %v2149_v1 }
 0x95d   :  { %v3147_v53 = vpop.f32.mrf.mxu1 }
 0x95e   :  { %v2152_v52 = vadd.f32 %v3147_v53, %v3115_v21  ;;  %v2226_v56 = vpack.c.bf16 %v2197_v63, %v2196_v44  ;;  %v2184_v38 = vadd.f32 %v3792_v23, %v2141_v55  ;;  %v2202_v3 = vmax.f32 %v2186_v40, 0.0  ;;  %v3367_v21 = vld [vmem:[#allocation7 + $0x4a0] ss:$8 sps:$4 sm:$0xff]  }
 0x95f   :  { %v2143_v60 = vpop.f32.mrf.mxu1  ;;  %3194 = vmatprep.subr.bf16.mxu1 %v3367_v21 }
 0x960   :  { %v2187_v42 = vadd.f32 %v3792_v23, %v2152_v52  ;;  %v2144_v59 = vadd.f32 %v2143_v60, %v1998_v32  ;;  %3172 = vmatprep.mubr.bf16.mxu0 %v2226_v56  ;;  %v2200_v16 = vmax.f32 %v2184_v38, 0.0  ;;  %3195 = vmatpush3.bf16.msra.mxu1 %v3367_v21 }
 0x961   :  { %v3150_v57 = vpop.f32.mrf.mxu1  ;;  %3173 = vmatmul.mubr.bf16.gmra.mxu0 %v2227_v30  ;;  %3196 = vmatprep.subr.bf16.mxu1 %v3368_v47 }
 0x962   :  { %v2185_v33 = vadd.f32 %v3792_v23, %v2144_v59  ;;  %v2203_v20 = vmax.f32 %v2187_v42, 0.0  ;;  %v2165_v8 = vadd.f32 %v3150_v57, %v3118_v49 }
 0x963   :  { %v2156_v46 = vpop.f32.mrf.mxu1 }
 0x964   :  { %v2201_v37 = vmax.f32 %v2185_v33, 0.0  ;;  %v2157_v4 = vadd.f32 %v2156_v46, %v2011_v39  ;;  %v2229_v14 = vpack.c.bf16 %v2203_v20, %v2202_v3  ;;  %v2190_v7 = vadd.f32 %v3792_v23, %v2165_v8  ;;  %3197 = vmatpush3.bf16.msra.mxu1 %v3368_v47 }
 0x965   :  { %v3151_v10 = vpop.f32.mrf.mxu1  ;;  %3198 = vmatprep.subr.bf16.mxu1 %v3369_v45 }
 0x966   :  { %v2168_v24 = vadd.f32 %v3151_v10, %v3119_v61  ;;  %v2228_v28 = vpack.c.bf16 %v2201_v37, %v2200_v16  ;;  %v2188_v41 = vadd.f32 %v3792_v23, %v2157_v4  ;;  %v2206_v13 = vmax.f32 %v2190_v7, 0.0 }
 0x967   :  { %v2159_v9 = vpop.f32.mrf.mxu1 }
 0x968   :  { %v2191_v54 = vadd.f32 %v3792_v23, %v2168_v24  ;;  %v2160_v6 = vadd.f32 %v2159_v9, %v2014_v48  ;;  %3176 = vmatprep.mubr.bf16.mxu0 %v2228_v28  ;;  %v2204_v12 = vmax.f32 %v2188_v41, 0.0  ;;  %3199 = vmatpush3.bf16.msra.mxu1 %v3369_v45 }
 0x969   :  { %3177 = vmatmul.mubr.bf16.gmra.mxu0 %v2229_v14 }
 0x96a   :  { %v2189_v17 = vadd.f32 %v3792_v23, %v2160_v6  ;;  %v2207_v22 = vmax.f32 %v2191_v54, 0.0  ;;  %v2718_v23 = vld [vmem:[#allocation8 + $0x7] ss:$0 sm:$0xff] }
 0x96c   :  { %v2205_v50 = vmax.f32 %v2189_v17, 0.0  ;;  %v2231_v19 = vpack.c.bf16 %v2207_v22, %v2206_v13 }
 0x96e   :  { %v2230_v18 = vpack.c.bf16 %v2205_v50, %v2204_v12  ;;  %v2727_v50 = vld [vmem:[#allocation8 + $0x8] ss:$0 sm:$0xff] }
 0x970   :  { %3180 = vmatprep.mubr.bf16.mxu0 %v2230_v18 }
 0x971   :  { %3181 = vmatmul.mubr.bf16.gmra.mxu0 %v2231_v19 }
 0xa19   :  { %v3170_v0 = vpop.f32.mrf.mxu0 }
 0xa1a   :  { %v2328_v62 = vadd.f32 %v3170_v0, %v2718_v23 }
 0xa1b   :  { %v2319_v58 = vpop.f32.mrf.mxu0 }
 0xa1c   :  { %v2320_v27 = vadd.f32 %v2718_v23, %v2319_v58  ;;  %v2384_v15 = vmax.f32 %v2328_v62, 0.0 }
 0xa1d   :  { %v3171_v43 = vpop.f32.mrf.mxu0 }
 0xa1e   :  { %v2331_v26 = vadd.f32 %v3171_v43, %v2718_v23  ;;  %v2382_v5 = vmax.f32 %v2320_v27, 0.0 }
 0xa1f   :  { %v2322_v25 = vpop.f32.mrf.mxu0 }
 0xa20   :  { %v2323_v29 = vadd.f32 %v2718_v23, %v2322_v25  ;;  %v2385_v32 = vmax.f32 %v2331_v26, 0.0 }
 0xa21   :  { %v3174_v2 = vpop.f32.mrf.mxu0 }
 0xa22   :  { %v2383_v51 = vmax.f32 %v2323_v29, 0.0  ;;  %v2415_v36 = vpack.c.bf16 %v2385_v32, %v2384_v15  ;;  %v2344_v63 = vadd.f32 %v3174_v2, %v2718_v23 }
 0xa23   :  { %v2335_v31 = vpop.f32.mrf.mxu0 }
 0xa24   :  { %v2414_v35 = vpack.c.bf16 %v2383_v51, %v2382_v5  ;;  %v2336_v49 = vadd.f32 %v2718_v23, %v2335_v31  ;;  %v2388_v30 = vmax.f32 %v2344_v63, 0.0 }
 0xa25   :  { %v3175_v34 = vpop.f32.mrf.mxu0 }
 0xa26   :  { %v2347_v44 = vadd.f32 %v3175_v34, %v2718_v23  ;;  %3200 = vmatprep.mubr.bf16.mxu1 %v2414_v35  ;;  %v2386_v52 = vmax.f32 %v2336_v49, 0.0 }
 0xa27   :  { %v2338_v55 = vpop.f32.mrf.mxu0  ;;  %3201 = vmatmul.mubr.bf16.vlgmr.msra.gmra.mxu1 %v2415_v36 }
 0xa28   :  { %v2339_v11 = vadd.f32 %v2718_v23, %v2338_v55  ;;  %v2389_v1 = vmax.f32 %v2347_v44, 0.0 }
 0xa29   :  { %v3178_v53 = vpop.f32.mrf.mxu0 }
 0xa2a   :  { %v2387_v56 = vmax.f32 %v2339_v11, 0.0  ;;  %v2417_v38 = vpack.c.bf16 %v2389_v1, %v2388_v30  ;;  %v2360_v57 = vadd.f32 %v3178_v53, %v2718_v23 }
 0xa2b   :  { %v2351_v60 = vpop.f32.mrf.mxu0 }
 0xa2c   :  { %v2416_v39 = vpack.c.bf16 %v2387_v56, %v2386_v52  ;;  %v2352_v59 = vadd.f32 %v2718_v23, %v2351_v60  ;;  %v2392_v4 = vmax.f32 %v2360_v57, 0.0 }
 0xa2d   :  { %v3179_v42 = vpop.f32.mrf.mxu0 }
 0xa2e   :  { %v2363_v40 = vadd.f32 %v3179_v42, %v2718_v23  ;;  %3204 = vmatprep.mubr.bf16.mxu1 %v2416_v39  ;;  %v2390_v16 = vmax.f32 %v2352_v59, 0.0 }
 0xa2f   :  { %v2354_v33 = vpop.f32.mrf.mxu0  ;;  %3205 = vmatmul.mubr.bf16.gmra.mxu1 %v2417_v38 }
 0xa30   :  { %v2355_v20 = vadd.f32 %v2718_v23, %v2354_v33  ;;  %v2393_v46 = vmax.f32 %v2363_v40, 0.0 }
 0xa31   :  { %v3182_v61 = vpop.f32.mrf.mxu0 }
 0xa32   :  { %v2391_v37 = vmax.f32 %v2355_v20, 0.0  ;;  %v2419_v10 = vpack.c.bf16 %v2393_v46, %v2392_v4  ;;  %v2376_v48 = vadd.f32 %v3182_v61, %v2718_v23 }
 0xa33   :  { %v2367_v3 = vpop.f32.mrf.mxu0 }
 0xa34   :  { %v2418_v8 = vpack.c.bf16 %v2391_v37, %v2390_v16  ;;  %v2368_v28 = vadd.f32 %v2718_v23, %v2367_v3  ;;  %v2396_v17 = vmax.f32 %v2376_v48, 0.0 }
 0xa35   :  { %v3183_v24 = vpop.f32.mrf.mxu0 }
 0xa36   :  { %v2379_v14 = vadd.f32 %v3183_v24, %v2718_v23  ;;  %3208 = vmatprep.mubr.bf16.mxu1 %v2418_v8  ;;  %v2394_v6 = vmax.f32 %v2368_v28, 0.0 }
 0xa37   :  { %v2370_v9 = vpop.f32.mrf.mxu0  ;;  %3209 = vmatmul.mubr.bf16.gmra.mxu1 %v2419_v10 }
 0xa38   :  { %v2371_v41 = vadd.f32 %v2718_v23, %v2370_v9  ;;  %v2397_v54 = vmax.f32 %v2379_v14, 0.0 }
 0xa3a   :  { %v2395_v7 = vmax.f32 %v2371_v41, 0.0  ;;  %v2421_v12 = vpack.c.bf16 %v2397_v54, %v2396_v17 }
 0xa3c   :  { %v2420_v22 = vpack.c.bf16 %v2395_v7, %v2394_v6 }
 0xa3e   :  { %3212 = vmatprep.mubr.bf16.mxu1 %v2420_v22 }
 0xa3f   :  { %3213 = vmatmul.mubr.bf16.gmra.mxu1 %v2421_v12 }
 0xae7   :  { %v3202_v13 = vpop.f32.mrf.mxu1 }
 0xae8   :  { %v2518_v18 = vadd.f32 %v3202_v13, %v2727_v50 }
 0xae9   :  { %v2509_v19 = vpop.f32.mrf.mxu1 }
 0xaea   :  { %2574 = vst [vmem:[#allocation10 + $0x10] sm:$0xff] %v2518_v18  ;;  %v2510_v21 = vadd.f32 %v2727_v50, %v2509_v19 }
 0xaeb   :  { %v3203_v47 = vpop.f32.mrf.mxu1 }
 0xaec   :  { %2572 = vst [vmem:[#allocation10] sm:$0xff] %v2510_v21  ;;  %v2521_v45 = vadd.f32 %v3203_v47, %v2727_v50 }
 0xaed   :  { %v2512_v0 = vpop.f32.mrf.mxu1 }
 0xaee   :  { %2575 = vst [vmem:[#allocation10 + $0x18] sm:$0xff] %v2521_v45  ;;  %v2513_v58 = vadd.f32 %v2727_v50, %v2512_v0 }
 0xaef   :  { %v3206_v23 = vpop.f32.mrf.mxu1 }
 0xaf0   :  { %2573 = vst [vmem:[#allocation10 + $0x8] sm:$0xff] %v2513_v58  ;;  %v2534_v43 = vadd.f32 %v3206_v23, %v2727_v50 }
 0xaf1   :  { %v2525_v27 = vpop.f32.mrf.mxu1 }
 0xaf2   :  { %2578 = vst [vmem:[#allocation10 + $0x30] sm:$0xff] %v2534_v43  ;;  %v2526_v26 = vadd.f32 %v2727_v50, %v2525_v27 }
 0xaf3   :  { %v3207_v62 = vpop.f32.mrf.mxu1 }
 0xaf4   :  { %2576 = vst [vmem:[#allocation10 + $0x20] sm:$0xff] %v2526_v26  ;;  %v2537_v25 = vadd.f32 %v3207_v62, %v2727_v50 }
 0xaf5   :  { %v2528_v29 = vpop.f32.mrf.mxu1 }
 0xaf6   :  { %2579 = vst [vmem:[#allocation10 + $0x38] sm:$0xff] %v2537_v25  ;;  %v2529_v32 = vadd.f32 %v2727_v50, %v2528_v29 }
 0xaf7   :  { %v3210_v2 = vpop.f32.mrf.mxu1 }
 0xaf8   :  { %2577 = vst [vmem:[#allocation10 + $0x28] sm:$0xff] %v2529_v32  ;;  %v2550_v5 = vadd.f32 %v3210_v2, %v2727_v50 }
 0xaf9   :  { %v2541_v51 = vpop.f32.mrf.mxu1 }
 0xafa   :  { %2582 = vst [vmem:[#allocation10 + $0x50] sm:$0xff] %v2550_v5  ;;  %v2542_v15 = vadd.f32 %v2727_v50, %v2541_v51 }
 0xafb   :  { %v3211_v31 = vpop.f32.mrf.mxu1 }
 0xafc   :  { %2580 = vst [vmem:[#allocation10 + $0x40] sm:$0xff] %v2542_v15  ;;  %v2553_v35 = vadd.f32 %v3211_v31, %v2727_v50 }
 0xafd   :  { %v2544_v36 = vpop.f32.mrf.mxu1 }
 0xafe   :  { %2583 = vst [vmem:[#allocation10 + $0x58] sm:$0xff] %v2553_v35  ;;  %v2545_v34 = vadd.f32 %v2727_v50, %v2544_v36 }
 0xaff   :  { %v3214_v49 = vpop.f32.mrf.mxu1 }
 0xb00   :  { %2581 = vst [vmem:[#allocation10 + $0x48] sm:$0xff] %v2545_v34  ;;  %v2566_v44 = vadd.f32 %v3214_v49, %v2727_v50 }
 0xb01   :  { %v2557_v63 = vpop.f32.mrf.mxu1 }
 0xb02   :  { %2586 = vst [vmem:[#allocation10 + $0x70] sm:$0xff] %v2566_v44  ;;  %v2558_v55 = vadd.f32 %v2727_v50, %v2557_v63 }
 0xb03   :  { %v3215_v11 = vpop.f32.mrf.mxu1 }
 0xb04   :  { %2584 = vst [vmem:[#allocation10 + $0x60] sm:$0xff] %v2558_v55  ;;  %v2569_v1 = vadd.f32 %v3215_v11, %v2727_v50 }
 0xb05   :  { %v2560_v53 = vpop.f32.mrf.mxu1 }
 0xb06   :  { %2587 = vst [vmem:[#allocation10 + $0x78] sm:$0xff] %v2569_v1  ;;  %v2561_v52 = vadd.f32 %v2727_v50, %v2560_v53 }
 0xb08   :  { %2585 = vst [vmem:[#allocation10 + $0x68] sm:$0xff] %v2561_v52 }
 0xb09   :  { %3469 = shalt.err (!%p3466_p10)
}
 0xb0a   :  { %2599 = dma.vmem_to_hbm [thread:$0]  %s2594_s3, 2048, %s3820_s4, [#allocation4], %s3491_s1, %s3491_s1, %s3492_s30  }
 0xb0b   :  { %3484 = dma.done.wait [#allocation4], 2048  }
 0xb0c   :  { %3485 = vsyncadd [#allocation4], 4294965248 }
 0xb0d   :  { %2603 = vsyncpa [#allocation3], 1 }
 0xb0e   :  { %2604 = vsyncpa [#allocation6], 1 }
 0xb0f   :  { %2605 = vsyncpa [#allocation9], 1 }
 0xb10   :  { %2606 = vsyncpa [#allocation4], 1 }

</bundles_post_ra>
